<compile_context>
chip_gen: v5e
topology: v5e:2x2
jax: 0.10.0
libtpu: 0.0.40
codegen_flags: <defaults>
</compile_context>

<pallas_src>
import math

import numpy as np
import jax
import jax.numpy as jnp
from jax import lax
from jax.experimental import pallas as pl
from jax.experimental.pallas import tpu as pltpu  # noqa: F401  (TPU backend)

# ----------------------------- model sizes (small, consistent with the forward) -----------------------------
BATCH = 2
NUM_RULE_INPUTS = 6
NUM_STIM_INPUTS = 5
PAD_IN = 8              # raw feature dims zero-padded to the 8-sublane granularity
RULE_SEQ = 8            # <= max_tree_depth
STIM_SEQ = 10           # == GRIDSIZE_X * GRIDSIZE_Y + 1 (3*3+1)
MAX_TREE_DEPTH = 100    # pe max_len for rule transformer
MAX_TOKENS_STIM = 10    # pe max_len for stim transformer
EMB = 32                # embedding_dim
HID = 32                # num_hidden
NUM_OUT = 10            # num_motor_decision_outputs (small)
NHEAD = 1
LN_EPS = 1e-5

N_RULE_ROWS = BATCH * RULE_SEQ          # 16
N_STIM_ROWS = BATCH * STIM_SEQ          # 20
N_TOK = N_RULE_ROWS + N_STIM_ROWS       # 36  (merged token-stream rows)
NEG_INF = -1e30                         # additive attention-mask value (safe in f32)

# ----------------------------- single packed parameter slab layout -----------------------------
SLAB_W = 6 * EMB        # 192 lanes: widest entry is the fused rule+stim QKV weight
_SLAB_ALIGN = 8         # sublane-align every entry (clean, unmasked-offset loads)

_ENTRIES = [
    # merged rule+stim transformer blocks
    ("w_embed_cat", PAD_IN, 2 * EMB),
    ("b_embed_cat", 1, 2 * EMB),
    ("pe_m", N_TOK, EMB),
    ("w_qkv_cat", EMB, 6 * EMB),
    ("b_qkv_cat", 1, 6 * EMB),
    ("w_o_cat", EMB, 2 * EMB),
    ("b_o_cat", 1, 2 * EMB),
    ("ln0_g_m", N_TOK, EMB),
    ("ln0_b_m", N_TOK, EMB),
    ("w_mlp1_cat", EMB, 2 * EMB),
    ("b_mlp1_cat", 1, 2 * EMB),
    ("w_mlp2_cat", EMB, 2 * EMB),
    ("b_mlp2_cat", 1, 2 * EMB),
    ("ln1_g_m", N_TOK, EMB),
    ("ln1_b_m", N_TOK, EMB),
    ("self_mask", N_TOK, N_TOK),
    # cross-attention + head tail (last rule token only)
    ("ca_wq", EMB, EMB),
    ("ca_bq", 1, EMB),
    ("ca_wkv", EMB, 2 * EMB),
    ("ca_bkv", 1, 2 * EMB),
    ("ca_wo", EMB, EMB),
    ("ca_bo", 1, EMB),
    ("ln_ca_g", 1, EMB),
    ("ln_ca_b", 1, EMB),
    ("mlp_w1", EMB, HID),
    ("mlp_b1", 1, HID),
    ("mlp_w2", HID, HID),
    ("mlp_b2", 1, HID),
    ("ln_mlp_g", 1, HID),
    ("ln_mlp_b", 1, HID),
    ("w_out", HID, NUM_OUT),
    ("b_out", 1, NUM_OUT),
    ("ca_mask", BATCH, N_STIM_ROWS),
]


def _build_layout():
    offs, r = {}, 0
    for name, nr, nc in _ENTRIES:
        assert nc <= SLAB_W
        offs[name] = (r, nr, nc)
        r += -(-nr // _SLAB_ALIGN) * _SLAB_ALIGN
    return offs, r


_OFFS, SLAB_ROWS = _build_layout()      # SLAB_ROWS == 696 -> ~522 KiB f32 slab, one DMA


# ----------------------------- the single fused Pallas kernel -----------------------------
def _forward_kernel(x_ref, slab_ref, logp_ref, mlp_in_ref):
    def rd(name):                                   # static window load from the packed slab
        r, nr, nc = _OFFS[name]
        return slab_ref[pl.ds(r, nr), pl.ds(0, nc)]

    def lin(x, wname, bname):                       # single 2-D MXU push per linear
        return jnp.dot(x, rd(wname), preferred_element_type=jnp.float32) + rd(bname)

    def layernorm(x, g, b):
        mu = jnp.mean(x, axis=-1, keepdims=True)
        xc = x - mu
        var = jnp.mean(xc * xc, axis=-1, keepdims=True)
        return xc * lax.rsqrt(var + LN_EPS) * g + b

    def softmax_rows(s):
        m = jnp.max(s, axis=-1, keepdims=True)
        p = jnp.exp(s - m)
        return p * pl.reciprocal(jnp.sum(p, axis=-1, keepdims=True), approx=True)

    # first N_RULE_ROWS rows of the merged stream are rule tokens, the rest are stim tokens
    is_rule = lax.broadcasted_iota(jnp.int32, (N_TOK, EMB), 0) < N_RULE_ROWS

    def pick(y2):                                   # (N_TOK, 2*EMB) -> per-row stream select
        return jnp.where(is_rule, y2[:, :EMB], y2[:, EMB:2 * EMB])

    scale = 1.0 / math.sqrt(EMB // NHEAD)

    # ------------- fused rule+stim TransformerBlocks on the merged token stream -------------
    x0 = x_ref[...]                                                       # (36, 8)
    emb = pick(lin(x0, "w_embed_cat", "b_embed_cat")) + rd("pe_m")        # embed + positional enc

    qkv = lin(emb, "w_qkv_cat", "b_qkv_cat")                              # (36, 192), one pass
    q = jnp.where(is_rule, qkv[:, 0 * EMB:1 * EMB], qkv[:, 3 * EMB:4 * EMB])
    k = jnp.where(is_rule, qkv[:, 1 * EMB:2 * EMB], qkv[:, 4 * EMB:5 * EMB])
    v = jnp.where(is_rule, qkv[:, 2 * EMB:3 * EMB], qkv[:, 5 * EMB:6 * EMB])

    # one block-diagonal masked softmax covers both blocks' (and both batches') self-attention
    s = lax.dot_general(q, k, (((1,), (1,)), ((), ())),
                        preferred_element_type=jnp.float32) * scale + rd("self_mask")
    attn = jnp.dot(softmax_rows(s), v, preferred_element_type=jnp.float32)
    attn = pick(lin(attn, "w_o_cat", "b_o_cat"))

    a = layernorm(attn + emb, rd("ln0_g_m"), rd("ln0_b_m"))
    h = jnp.maximum(pick(lin(a, "w_mlp1_cat", "b_mlp1_cat")), 0.0)
    h = jnp.maximum(pick(lin(h, "w_mlp2_cat", "b_mlp2_cat")), 0.0)
    t_out = layernorm(h + a, rd("ln1_g_m"), rd("ln1_b_m"))                # (36, 32)

    # ------------- cross-attention + head, LAST rule token of each batch only -------------
    rule_last = jnp.concatenate(
        [t_out[b * RULE_SEQ + RULE_SEQ - 1: b * RULE_SEQ + RULE_SEQ, :] for b in range(BATCH)],
        axis=0)                                                           # (B, 32)
    stim_out = t_out[N_RULE_ROWS:, :]                                     # (B*S_stim, 32)

    qc = lin(rule_last, "ca_wq", "ca_bq")                                 # (B, 32)
    kvc = lin(stim_out, "ca_wkv", "ca_bkv")                               # (20, 64) fused K/V
    kc, vc = kvc[:, :EMB], kvc[:, EMB:2 * EMB]
    sc = lax.dot_general(qc, kc, (((1,), (1,)), ((), ())),
                         preferred_element_type=jnp.float32) * scale + rd("ca_mask")
    cross = jnp.dot(softmax_rows(sc), vc, preferred_element_type=jnp.float32)
    cross = lin(cross, "ca_wo", "ca_bo")

    mlp_in = layernorm(cross, rd("ln_ca_g"), rd("ln_ca_b")) + rule_last   # (B, 32)
    mlp_in_ref[...] = mlp_in                                              # output #2

    hh = jnp.maximum(lin(mlp_in, "mlp_w1", "mlp_b1"), 0.0)
    hh = jnp.maximum(lin(hh, "mlp_w2", "mlp_b2"), 0.0)
    mo = layernorm(hh, rd("ln_mlp_g"), rd("ln_mlp_b"))

    logits = lin(mo, "w_out", "b_out")                                    # (B, NUM_OUT)
    mx = jnp.max(logits, axis=-1, keepdims=True)
    sh = logits - mx
    logp_ref[...] = sh - jnp.log(jnp.sum(jnp.exp(sh), axis=-1, keepdims=True))   # output #1


# ----------------------------- one-time parameter packing (cache the result!) -----------------------------
def pack_params(params):
    """Pack every parameter / PE / attention-mask into ONE f32 slab.  Call once, reuse forever."""
    rtf, stf, ca = params["rule_tf"], params["stim_tf"], params["cross_attn"]
    ra, sa = rtf["attn"], stf["attn"]

    def pad_k(w):                                   # zero-pad in_features rows to PAD_IN (exact)
        return jnp.pad(w, ((0, PAD_IN - w.shape[0]), (0, 0)))

    def per_row(rule_p, stim_p):                    # (1,E) params -> merged per-token-row (36,E)
        return jnp.concatenate([jnp.tile(rule_p, (N_RULE_ROWS, 1)),
                                jnp.tile(stim_p, (N_STIM_ROWS, 1))], axis=0)

    # block-diagonal additive attention masks (0 = allowed, NEG_INF = forbidden)
    grp = np.concatenate([np.repeat(np.arange(BATCH), RULE_SEQ),
                          BATCH + np.repeat(np.arange(BATCH), STIM_SEQ)])
    self_mask = np.where(grp[:, None] == grp[None, :], 0.0, NEG_INF).astype(np.float32)
    key_batch = np.repeat(np.arange(BATCH), STIM_SEQ)
    ca_mask = np.where(np.arange(BATCH)[:, None] == key_batch[None, :], 0.0, NEG_INF).astype(np.float32)

    vals = {
        "w_embed_cat": jnp.concatenate([pad_k(rtf["w_embed"]), pad_k(stf["w_embed"])], axis=1),
        "b_embed_cat": jnp.concatenate([rtf["b_embed"], stf["b_embed"]], axis=1),
        "pe_m": jnp.concatenate([jnp.tile(rtf["pe"][:RULE_SEQ], (BATCH, 1)),
                                 jnp.tile(stf["pe"][:STIM_SEQ], (BATCH, 1))], axis=0),
        "w_qkv_cat": jnp.concatenate([ra["wq"], ra["wk"], ra["wv"],
                                      sa["wq"], sa["wk"], sa["wv"]], axis=1),
        "b_qkv_cat": jnp.concatenate([ra["bq"], ra["bk"], ra["bv"],
                                      sa["bq"], sa["bk"], sa["bv"]], axis=1),
        "w_o_cat": jnp.concatenate([ra["wo"], sa["wo"]], axis=1),
        "b_o_cat": jnp.concatenate([ra["bo"], sa["bo"]], axis=1),
        "ln0_g_m": per_row(rtf["ln0_g"], stf["ln0_g"]),
        "ln0_b_m": per_row(rtf["ln0_b"], stf["ln0_b"]),
        "w_mlp1_cat": jnp.concatenate([rtf["mlp_w1"], stf["mlp_w1"]], axis=1),
        "b_mlp1_cat": jnp.concatenate([rtf["mlp_b1"], stf["mlp_b1"]], axis=1),
        "w_mlp2_cat": jnp.concatenate([rtf["mlp_w2"], stf["mlp_w2"]], axis=1),
        "b_mlp2_cat": jnp.concatenate([rtf["mlp_b2"], stf["mlp_b2"]], axis=1),
        "ln1_g_m": per_row(rtf["ln1_g"], stf["ln1_g"]),
        "ln1_b_m": per_row(rtf["ln1_b"], stf["ln1_b"]),
        "self_mask": jnp.asarray(self_mask),
        "ca_wq": ca["wq"], "ca_bq": ca["bq"],
        "ca_wkv": jnp.concatenate([ca["wk"], ca["wv"]], axis=1),
        "ca_bkv": jnp.concatenate([ca["bk"], ca["bv"]], axis=1),
        "ca_wo": ca["wo"], "ca_bo": ca["bo"],
        "ln_ca_g": params["ln_ca_g"], "ln_ca_b": params["ln_ca_b"],
        "mlp_w1": params["mlp_w1"], "mlp_b1": params["mlp_b1"],
        "mlp_w2": params["mlp_w2"], "mlp_b2": params["mlp_b2"],
        "ln_mlp_g": params["ln_mlp_g"], "ln_mlp_b": params["ln_mlp_b"],
        "w_out": params["w_out"], "b_out": params["b_out"],
        "ca_mask": jnp.asarray(ca_mask),
    }

    slab = jnp.zeros((SLAB_ROWS, SLAB_W), jnp.float32)
    for name, nr, nc in _ENTRIES:
        a = jnp.asarray(vals[name], jnp.float32)
        assert a.shape == (nr, nc), (name, a.shape, (nr, nc))
        r = _OFFS[name][0]
        slab = slab.at[r:r + nr, :nc].set(a)
    return slab


# ----------------------------- wrapper (one pallas_call, no per-call param packing) -----------------------------
@jax.jit
def simple_cross_attn_forward(param_slab, rule_inputs, stim_inputs):
    # TODO(synk): training-mode dropout / noise injection not implemented (inference semantics).
    assert rule_inputs.shape == (BATCH, RULE_SEQ, NUM_RULE_INPUTS)
    assert stim_inputs.shape == (BATCH, STIM_SEQ, NUM_STIM_INPUTS, 1)

    # Per-call activation prep: free row-major reshapes + tiny zero-pads + one concat, all fused
    # by XLA inside this jit.  Rule token rows first, stim token rows second.
    rule2d = jnp.pad(rule_inputs.reshape(N_RULE_ROWS, NUM_RULE_INPUTS),
                     ((0, 0), (0, PAD_IN - NUM_RULE_INPUTS)))
    stim2d = jnp.pad(stim_inputs.reshape(N_STIM_ROWS, NUM_STIM_INPUTS),
                     ((0, 0), (0, PAD_IN - NUM_STIM_INPUTS)))
    x0 = jnp.concatenate([rule2d, stim2d], axis=0)                        # (36, 8)

    logp, mlp_in_last = pl.pallas_call(
        _forward_kernel,
        out_shape=(jax.ShapeDtypeStruct((BATCH, NUM_OUT), jnp.float32),
                   jax.ShapeDtypeStruct((BATCH, EMB), jnp.float32)),
    )(x0, param_slab)
    return logp, mlp_in_last


# ----------------------------- deterministic parameter init -----------------------------
def _init_linear(key, din, dout, scale=0.05):
    kw, kb = jax.random.split(key)
    w = jax.random.normal(kw, (din, dout), jnp.float32) * scale
    b = jax.random.normal(kb, (1, dout), jnp.float32) * scale
    return w, b


def _init_mha(key, E):
    kq, kk, kv, ko = jax.random.split(key, 4)
    wq, bq = _init_linear(kq, E, E)
    wk, bk = _init_linear(kk, E, E)
    wv, bv = _init_linear(kv, E, E)
    wo, bo = _init_linear(ko, E, E)
    return dict(wq=wq, bq=bq, wk=wk, bk=bk, wv=wv, bv=bv, wo=wo, bo=bo)


def _make_pe(max_len, d_model):
    position = jnp.arange(max_len, dtype=jnp.float32)[:, None]
    div_term = jnp.exp(jnp.arange(0, d_model, 2, dtype=jnp.float32) * (-math.log(10000.0) / d_model))
    pe = jnp.zeros((max_len, d_model), jnp.float32)
    pe = pe.at[:, 0::2].set(jnp.sin(position * div_term))
    pe = pe.at[:, 1::2].set(jnp.cos(position * div_term))
    return pe


def _init_tblock(key, din, E, max_len):
    k0, k1, k2, k3 = jax.random.split(key, 4)
    w_embed, b_embed = _init_linear(k0, din, E)
    attn = _init_mha(k1, E)
    mlp_w1, mlp_b1 = _init_linear(k2, E, E)
    mlp_w2, mlp_b2 = _init_linear(k3, E, E)
    return dict(
        w_embed=w_embed, b_embed=b_embed, pe=_make_pe(max_len, E), attn=attn,
        mlp_w1=mlp_w1, mlp_b1=mlp_b1, mlp_w2=mlp_w2, mlp_b2=mlp_b2,
        ln0_g=jnp.ones((1, E), jnp.float32), ln0_b=jnp.zeros((1, E), jnp.float32),
        ln1_g=jnp.ones((1, E), jnp.float32), ln1_b=jnp.zeros((1, E), jnp.float32),
    )


def init_params(key):
    k0, k1, k2, k3, k4, k5 = jax.random.split(key, 6)
    mlp_w1, mlp_b1 = _init_linear(k3, EMB, HID)
    mlp_w2, mlp_b2 = _init_linear(k4, HID, HID)
    w_out, b_out = _init_linear(k5, HID, NUM_OUT)
    return dict(
        rule_tf=_init_tblock(k0, NUM_RULE_INPUTS, EMB, MAX_TREE_DEPTH),
        stim_tf=_init_tblock(k1, NUM_STIM_INPUTS, EMB, MAX_TOKENS_STIM),
        cross_attn=_init_mha(k2, EMB),
        ln_ca_g=jnp.ones((1, EMB), jnp.float32), ln_ca_b=jnp.zeros((1, EMB), jnp.float32),
        mlp_w1=mlp_w1, mlp_b1=mlp_b1, mlp_w2=mlp_w2, mlp_b2=mlp_b2,
        ln_mlp_g=jnp.ones((1, HID), jnp.float32), ln_mlp_b=jnp.zeros((1, HID), jnp.float32),
        w_out=w_out, b_out=b_out,
    )


# ----------------------------- pure-JAX reference (same math, no Pallas) -----------------------------
def _ref_forward(params, rule_inputs, stim_inputs):
    def lin(x, w, b, relu=False):
        y = x @ w + b
        return jnp.maximum(y, 0.0) if relu else y

    def ln(x, g, b, eps=LN_EPS):
        m = x.mean(-1, keepdims=True)
        v = ((x - m) ** 2).mean(-1, keepdims=True)
        return (x - m) / jnp.sqrt(v + eps) * g + b

    def mha(qx, kvx, p):
        E = qx.shape[-1]
        q = lin(qx, p["wq"], p["bq"]); k = lin(kvx, p["wk"], p["bk"]); v = lin(kvx, p["wv"], p["bv"])
        s = jnp.einsum("bqd,bkd->bqk", q, k) * (1.0 / math.sqrt(E))
        a = jax.nn.softmax(s, axis=-1)
        return lin(jnp.einsum("bqk,bkd->bqd", a, v), p["wo"], p["bo"])

    def tblock(x, p):
        emb = lin(x, p["w_embed"], p["b_embed"]) + p["pe"][: x.shape[1]][None]
        a = ln(mha(emb, emb, p["attn"]) + emb, p["ln0_g"], p["ln0_b"])
        h = lin(lin(a, p["mlp_w1"], p["mlp_b1"], True), p["mlp_w2"], p["mlp_b2"], True)
        return ln(h + a, p["ln1_g"], p["ln1_b"])

    rule_out = tblock(rule_inputs, params["rule_tf"])
    stim_out = tblock(stim_inputs[:, :, :, 0], params["stim_tf"])
    cross = mha(rule_out, stim_out, params["cross_attn"])
    mlp_in = ln(cross, params["ln_ca_g"], params["ln_ca_b"]) + rule_out
    h = lin(lin(mlp_in, params["mlp_w1"], params["mlp_b1"], True), params["mlp_w2"], params["mlp_b2"], True)
    mlp_out = ln(h, params["ln_mlp_g"], params["ln_mlp_b"])
    logits = lin(mlp_out[:, -1, :], params["w_out"], params["b_out"])
    return jax.nn.log_softmax(logits, axis=-1), mlp_in[:, -1, :]


# ----------------------------- main -----------------------------
if __name__ == "__main__":
    key = jax.random.PRNGKey(0)
    k_params, k_rule, k_stim = jax.random.split(key, 3)

    params = init_params(k_params)
    rule_inputs = jax.random.normal(k_rule, (BATCH, RULE_SEQ, NUM_RULE_INPUTS), jnp.float32)
    stim_inputs = jax.random.normal(k_stim, (BATCH, STIM_SEQ, NUM_STIM_INPUTS, 1), jnp.float32)

    # pack parameters ONCE; the cached slab is reused for every forward call
    param_slab = jax.block_until_ready(pack_params(params))

    outputs, mlp_in_last = jax.block_until_ready(
        simple_cross_attn_forward(param_slab, rule_inputs, stim_inputs)
    )

    # sanity checks against pure-JAX reference (approx-reciprocal softmax -> 2e-3 parity bar)
    ref_out, ref_mlp = _ref_forward(params, rule_inputs, stim_inputs)
    assert outputs.shape == (BATCH, NUM_OUT)
    assert mlp_in_last.shape == (BATCH, EMB)
    assert bool(jnp.allclose(jnp.exp(outputs).sum(-1), 1.0, atol=1e-4))
    assert bool(jnp.allclose(outputs, ref_out, atol=2e-3, rtol=2e-3))
    assert bool(jnp.allclose(mlp_in_last, ref_mlp, atol=2e-3, rtol=2e-3))

    print("KERNEL_OK")
</pallas_src>

<mosaic_0001>
module attributes {stable_mosaic.version = 11 : i64} {
  func.func @_forward_kernel(%arg0: memref<36x8xf32, #tpu.memory_space<vmem>>, %arg1: memref<696x192xf32, #tpu.memory_space<vmem>>, %arg2: memref<2x10xf32, #tpu.memory_space<vmem>>, %arg3: memref<2x32xf32, #tpu.memory_space<vmem>>) attributes {dimension_semantics = [], scalar_prefetch = 0 : i64, scratch_operands = 0 : i64, tpu.core_type = #tpu.core_type<tc>} {
    %0 = tpu.iota {dimensions = array<i32: 0>} : vector<36x32xi32>
    %c16_i32 = arith.constant 16 : i32
    %1 = vector.broadcast %c16_i32 : i32 to vector<36x32xi32>
    %2 = arith.cmpi slt, %0, %1 : vector<36x32xi32>
    %c0 = arith.constant 0 : index
    %c0_0 = arith.constant 0 : index
    %3 = vector.load %arg0[%c0, %c0_0] : memref<36x8xf32, #tpu.memory_space<vmem>>, vector<36x8xf32>
    %c0_1 = arith.constant 0 : index
    %c0_2 = arith.constant 0 : index
    %4 = vector.load %arg1[%c0_1, %c0_2] : memref<696x192xf32, #tpu.memory_space<vmem>>, vector<8x64xf32>
    %cst = arith.constant dense<0.000000e+00> : vector<36x64xf32>
    %5 = tpu.matmul %3, %4, %cst {dimension_numbers = #tpu.dot_dimension_numbers<[1], [0], [0], [1], [0, 0, 1, 1], [], []>} : vector<36x8xf32>, vector<8x64xf32>, vector<36x64xf32> -> vector<36x64xf32>
    %c8 = arith.constant 8 : index
    %c0_3 = arith.constant 0 : index
    %6 = vector.load %arg1[%c8, %c0_3] : memref<696x192xf32, #tpu.memory_space<vmem>>, vector<1x64xf32>
    %7 = vector.broadcast %6 : vector<1x64xf32> to vector<36x64xf32>
    %8 = arith.addf %5, %7 : vector<36x64xf32>
    %9 = vector.extract_strided_slice %8 {offsets = [0, 0], sizes = [36, 32], strides = [1, 1]} : vector<36x64xf32> to vector<36x32xf32>
    %10 = vector.extract_strided_slice %8 {offsets = [0, 32], sizes = [36, 32], strides = [1, 1]} : vector<36x64xf32> to vector<36x32xf32>
    %11 = arith.select %2, %9, %10 : vector<36x32xi1>, vector<36x32xf32>
    %c16 = arith.constant 16 : index
    %c0_4 = arith.constant 0 : index
    %12 = vector.load %arg1[%c16, %c0_4] : memref<696x192xf32, #tpu.memory_space<vmem>>, vector<36x32xf32>
    %13 = arith.addf %11, %12 : vector<36x32xf32>
    %c56 = arith.constant 56 : index
    %c0_5 = arith.constant 0 : index
    %14 = vector.load %arg1[%c56, %c0_5] : memref<696x192xf32, #tpu.memory_space<vmem>>, vector<32x192xf32>
    %cst_6 = arith.constant dense<0.000000e+00> : vector<36x192xf32>
    %15 = tpu.matmul %13, %14, %cst_6 {dimension_numbers = #tpu.dot_dimension_numbers<[1], [0], [0], [1], [0, 0, 1, 1], [], []>} : vector<36x32xf32>, vector<32x192xf32>, vector<36x192xf32> -> vector<36x192xf32>
    %c88 = arith.constant 88 : index
    %c0_7 = arith.constant 0 : index
    %16 = vector.load %arg1[%c88, %c0_7] : memref<696x192xf32, #tpu.memory_space<vmem>>, vector<1x192xf32>
    %17 = vector.broadcast %16 : vector<1x192xf32> to vector<36x192xf32>
    %18 = arith.addf %15, %17 : vector<36x192xf32>
    %19 = vector.extract_strided_slice %18 {offsets = [0, 0], sizes = [36, 32], strides = [1, 1]} : vector<36x192xf32> to vector<36x32xf32>
    %20 = vector.extract_strided_slice %18 {offsets = [0, 96], sizes = [36, 32], strides = [1, 1]} : vector<36x192xf32> to vector<36x32xf32>
    %21 = arith.select %2, %19, %20 : vector<36x32xi1>, vector<36x32xf32>
    %22 = vector.extract_strided_slice %18 {offsets = [0, 32], sizes = [36, 32], strides = [1, 1]} : vector<36x192xf32> to vector<36x32xf32>
    %23 = vector.extract_strided_slice %18 {offsets = [0, 128], sizes = [36, 32], strides = [1, 1]} : vector<36x192xf32> to vector<36x32xf32>
    %24 = arith.select %2, %22, %23 : vector<36x32xi1>, vector<36x32xf32>
    %25 = vector.extract_strided_slice %18 {offsets = [0, 64], sizes = [36, 32], strides = [1, 1]} : vector<36x192xf32> to vector<36x32xf32>
    %26 = vector.extract_strided_slice %18 {offsets = [0, 160], sizes = [36, 32], strides = [1, 1]} : vector<36x192xf32> to vector<36x32xf32>
    %27 = arith.select %2, %25, %26 : vector<36x32xi1>, vector<36x32xf32>
    %cst_8 = arith.constant dense<0.000000e+00> : vector<36x36xf32>
    %28 = tpu.matmul %21, %24, %cst_8 {dimension_numbers = #tpu.dot_dimension_numbers<[1], [1], [0], [0], [0, 0, 1, 0], [], []>} : vector<36x32xf32>, vector<36x32xf32>, vector<36x36xf32> -> vector<36x36xf32>
    %cst_9 = arith.constant 0.176776692 : f32
    %29 = vector.broadcast %cst_9 : f32 to vector<36x36xf32>
    %30 = arith.mulf %28, %29 : vector<36x36xf32>
    %c376 = arith.constant 376 : index
    %c0_10 = arith.constant 0 : index
    %31 = vector.load %arg1[%c376, %c0_10] : memref<696x192xf32, #tpu.memory_space<vmem>>, vector<36x36xf32>
    %32 = arith.addf %30, %31 : vector<36x36xf32>
    %cst_11 = arith.constant dense<0xFF800000> : vector<36xf32>
    %33 = vector.multi_reduction <maximumf>, %32, %cst_11 [1] : vector<36x36xf32> to vector<36xf32>
    %34 = vector.shape_cast %33 : vector<36xf32> to vector<36x1xf32>
    %35 = vector.broadcast %34 : vector<36x1xf32> to vector<36x36xf32>
    %36 = arith.subf %32, %35 : vector<36x36xf32>
    %37 = math.exp %36 : vector<36x36xf32>
    %cst_12 = arith.constant dense<0.000000e+00> : vector<36xf32>
    %38 = vector.multi_reduction <add>, %37, %cst_12 [1] : vector<36x36xf32> to vector<36xf32>
    %39 = vector.shape_cast %38 : vector<36xf32> to vector<36x1xf32>
    %40 = tpu.reciprocal %39 {approx = true} : vector<36x1xf32> -> vector<36x1xf32>
    %41 = vector.broadcast %40 : vector<36x1xf32> to vector<36x36xf32>
    %42 = arith.mulf %37, %41 : vector<36x36xf32>
    %cst_13 = arith.constant dense<0.000000e+00> : vector<36x32xf32>
    %43 = tpu.matmul %42, %27, %cst_13 {dimension_numbers = #tpu.dot_dimension_numbers<[1], [0], [0], [1], [0, 0, 1, 1], [], []>} : vector<36x36xf32>, vector<36x32xf32>, vector<36x32xf32> -> vector<36x32xf32>
    %c96 = arith.constant 96 : index
    %c0_14 = arith.constant 0 : index
    %44 = vector.load %arg1[%c96, %c0_14] : memref<696x192xf32, #tpu.memory_space<vmem>>, vector<32x64xf32>
    %cst_15 = arith.constant dense<0.000000e+00> : vector<36x64xf32>
    %45 = tpu.matmul %43, %44, %cst_15 {dimension_numbers = #tpu.dot_dimension_numbers<[1], [0], [0], [1], [0, 0, 1, 1], [], []>} : vector<36x32xf32>, vector<32x64xf32>, vector<36x64xf32> -> vector<36x64xf32>
    %c128 = arith.constant 128 : index
    %c0_16 = arith.constant 0 : index
    %46 = vector.load %arg1[%c128, %c0_16] : memref<696x192xf32, #tpu.memory_space<vmem>>, vector<1x64xf32>
    %47 = vector.broadcast %46 : vector<1x64xf32> to vector<36x64xf32>
    %48 = arith.addf %45, %47 : vector<36x64xf32>
    %49 = vector.extract_strided_slice %48 {offsets = [0, 0], sizes = [36, 32], strides = [1, 1]} : vector<36x64xf32> to vector<36x32xf32>
    %50 = vector.extract_strided_slice %48 {offsets = [0, 32], sizes = [36, 32], strides = [1, 1]} : vector<36x64xf32> to vector<36x32xf32>
    %51 = arith.select %2, %49, %50 : vector<36x32xi1>, vector<36x32xf32>
    %52 = arith.addf %51, %13 : vector<36x32xf32>
    %c136 = arith.constant 136 : index
    %c0_17 = arith.constant 0 : index
    %53 = vector.load %arg1[%c136, %c0_17] : memref<696x192xf32, #tpu.memory_space<vmem>>, vector<36x32xf32>
    %c176 = arith.constant 176 : index
    %c0_18 = arith.constant 0 : index
    %54 = vector.load %arg1[%c176, %c0_18] : memref<696x192xf32, #tpu.memory_space<vmem>>, vector<36x32xf32>
    %cst_19 = arith.constant dense<0.000000e+00> : vector<36xf32>
    %55 = vector.multi_reduction <add>, %52, %cst_19 [1] : vector<36x32xf32> to vector<36xf32>
    %56 = vector.shape_cast %55 : vector<36xf32> to vector<36x1xf32>
    %cst_20 = arith.constant 3.200000e+01 : f32
    %57 = vector.broadcast %cst_20 : f32 to vector<36x1xf32>
    %58 = arith.divf %56, %57 : vector<36x1xf32>
    %59 = vector.broadcast %58 : vector<36x1xf32> to vector<36x32xf32>
    %60 = arith.subf %52, %59 : vector<36x32xf32>
    %61 = arith.mulf %60, %60 : vector<36x32xf32>
    %cst_21 = arith.constant dense<0.000000e+00> : vector<36xf32>
    %62 = vector.multi_reduction <add>, %61, %cst_21 [1] : vector<36x32xf32> to vector<36xf32>
    %63 = vector.shape_cast %62 : vector<36xf32> to vector<36x1xf32>
    %cst_22 = arith.constant 3.200000e+01 : f32
    %64 = vector.broadcast %cst_22 : f32 to vector<36x1xf32>
    %65 = arith.divf %63, %64 : vector<36x1xf32>
    %cst_23 = arith.constant 9.99999974E-6 : f32
    %66 = vector.broadcast %cst_23 : f32 to vector<36x1xf32>
    %67 = arith.addf %65, %66 : vector<36x1xf32>
    %68 = math.rsqrt %67 : vector<36x1xf32>
    %69 = vector.broadcast %68 : vector<36x1xf32> to vector<36x32xf32>
    %70 = arith.mulf %60, %69 : vector<36x32xf32>
    %71 = arith.mulf %70, %53 : vector<36x32xf32>
    %72 = arith.addf %71, %54 : vector<36x32xf32>
    %c216 = arith.constant 216 : index
    %c0_24 = arith.constant 0 : index
    %73 = vector.load %arg1[%c216, %c0_24] : memref<696x192xf32, #tpu.memory_space<vmem>>, vector<32x64xf32>
    %cst_25 = arith.constant dense<0.000000e+00> : vector<36x64xf32>
    %74 = tpu.matmul %72, %73, %cst_25 {dimension_numbers = #tpu.dot_dimension_numbers<[1], [0], [0], [1], [0, 0, 1, 1], [], []>} : vector<36x32xf32>, vector<32x64xf32>, vector<36x64xf32> -> vector<36x64xf32>
    %c248 = arith.constant 248 : index
    %c0_26 = arith.constant 0 : index
    %75 = vector.load %arg1[%c248, %c0_26] : memref<696x192xf32, #tpu.memory_space<vmem>>, vector<1x64xf32>
    %76 = vector.broadcast %75 : vector<1x64xf32> to vector<36x64xf32>
    %77 = arith.addf %74, %76 : vector<36x64xf32>
    %78 = vector.extract_strided_slice %77 {offsets = [0, 0], sizes = [36, 32], strides = [1, 1]} : vector<36x64xf32> to vector<36x32xf32>
    %79 = vector.extract_strided_slice %77 {offsets = [0, 32], sizes = [36, 32], strides = [1, 1]} : vector<36x64xf32> to vector<36x32xf32>
    %80 = arith.select %2, %78, %79 : vector<36x32xi1>, vector<36x32xf32>
    %cst_27 = arith.constant 0.000000e+00 : f32
    %81 = vector.broadcast %cst_27 : f32 to vector<36x32xf32>
    %82 = arith.maximumf %80, %81 : vector<36x32xf32>
    %c256 = arith.constant 256 : index
    %c0_28 = arith.constant 0 : index
    %83 = vector.load %arg1[%c256, %c0_28] : memref<696x192xf32, #tpu.memory_space<vmem>>, vector<32x64xf32>
    %cst_29 = arith.constant dense<0.000000e+00> : vector<36x64xf32>
    %84 = tpu.matmul %82, %83, %cst_29 {dimension_numbers = #tpu.dot_dimension_numbers<[1], [0], [0], [1], [0, 0, 1, 1], [], []>} : vector<36x32xf32>, vector<32x64xf32>, vector<36x64xf32> -> vector<36x64xf32>
    %c288 = arith.constant 288 : index
    %c0_30 = arith.constant 0 : index
    %85 = vector.load %arg1[%c288, %c0_30] : memref<696x192xf32, #tpu.memory_space<vmem>>, vector<1x64xf32>
    %86 = vector.broadcast %85 : vector<1x64xf32> to vector<36x64xf32>
    %87 = arith.addf %84, %86 : vector<36x64xf32>
    %88 = vector.extract_strided_slice %87 {offsets = [0, 0], sizes = [36, 32], strides = [1, 1]} : vector<36x64xf32> to vector<36x32xf32>
    %89 = vector.extract_strided_slice %87 {offsets = [0, 32], sizes = [36, 32], strides = [1, 1]} : vector<36x64xf32> to vector<36x32xf32>
    %90 = arith.select %2, %88, %89 : vector<36x32xi1>, vector<36x32xf32>
    %cst_31 = arith.constant 0.000000e+00 : f32
    %91 = vector.broadcast %cst_31 : f32 to vector<36x32xf32>
    %92 = arith.maximumf %90, %91 : vector<36x32xf32>
    %93 = arith.addf %92, %72 : vector<36x32xf32>
    %c296 = arith.constant 296 : index
    %c0_32 = arith.constant 0 : index
    %94 = vector.load %arg1[%c296, %c0_32] : memref<696x192xf32, #tpu.memory_space<vmem>>, vector<36x32xf32>
    %c336 = arith.constant 336 : index
    %c0_33 = arith.constant 0 : index
    %95 = vector.load %arg1[%c336, %c0_33] : memref<696x192xf32, #tpu.memory_space<vmem>>, vector<36x32xf32>
    %cst_34 = arith.constant dense<0.000000e+00> : vector<36xf32>
    %96 = vector.multi_reduction <add>, %93, %cst_34 [1] : vector<36x32xf32> to vector<36xf32>
    %97 = vector.shape_cast %96 : vector<36xf32> to vector<36x1xf32>
    %cst_35 = arith.constant 3.200000e+01 : f32
    %98 = vector.broadcast %cst_35 : f32 to vector<36x1xf32>
    %99 = arith.divf %97, %98 : vector<36x1xf32>
    %100 = vector.broadcast %99 : vector<36x1xf32> to vector<36x32xf32>
    %101 = arith.subf %93, %100 : vector<36x32xf32>
    %102 = arith.mulf %101, %101 : vector<36x32xf32>
    %cst_36 = arith.constant dense<0.000000e+00> : vector<36xf32>
    %103 = vector.multi_reduction <add>, %102, %cst_36 [1] : vector<36x32xf32> to vector<36xf32>
    %104 = vector.shape_cast %103 : vector<36xf32> to vector<36x1xf32>
    %cst_37 = arith.constant 3.200000e+01 : f32
    %105 = vector.broadcast %cst_37 : f32 to vector<36x1xf32>
    %106 = arith.divf %104, %105 : vector<36x1xf32>
    %cst_38 = arith.constant 9.99999974E-6 : f32
    %107 = vector.broadcast %cst_38 : f32 to vector<36x1xf32>
    %108 = arith.addf %106, %107 : vector<36x1xf32>
    %109 = math.rsqrt %108 : vector<36x1xf32>
    %110 = vector.broadcast %109 : vector<36x1xf32> to vector<36x32xf32>
    %111 = arith.mulf %101, %110 : vector<36x32xf32>
    %112 = arith.mulf %111, %94 : vector<36x32xf32>
    %113 = arith.addf %112, %95 : vector<36x32xf32>
    %114 = vector.extract_strided_slice %113 {offsets = [7, 0], sizes = [1, 32], strides = [1, 1]} : vector<36x32xf32> to vector<1x32xf32>
    %115 = vector.extract_strided_slice %113 {offsets = [15, 0], sizes = [1, 32], strides = [1, 1]} : vector<36x32xf32> to vector<1x32xf32>
    %116 = tpu.concatenate %114, %115 in 0 : vector<1x32xf32>, vector<1x32xf32> -> vector<2x32xf32>
    %117 = vector.extract_strided_slice %113 {offsets = [16, 0], sizes = [20, 32], strides = [1, 1]} : vector<36x32xf32> to vector<20x32xf32>
    %c416 = arith.constant 416 : index
    %c0_39 = arith.constant 0 : index
    %118 = vector.load %arg1[%c416, %c0_39] : memref<696x192xf32, #tpu.memory_space<vmem>>, vector<32x32xf32>
    %cst_40 = arith.constant dense<0.000000e+00> : vector<2x32xf32>
    %119 = tpu.matmul %116, %118, %cst_40 {dimension_numbers = #tpu.dot_dimension_numbers<[1], [0], [0], [1], [0, 0, 1, 1], [], []>} : vector<2x32xf32>, vector<32x32xf32>, vector<2x32xf32> -> vector<2x32xf32>
    %c448 = arith.constant 448 : index
    %c0_41 = arith.constant 0 : index
    %120 = vector.load %arg1[%c448, %c0_41] : memref<696x192xf32, #tpu.memory_space<vmem>>, vector<1x32xf32>
    %121 = vector.broadcast %120 : vector<1x32xf32> to vector<2x32xf32>
    %122 = arith.addf %119, %121 : vector<2x32xf32>
    %c456 = arith.constant 456 : index
    %c0_42 = arith.constant 0 : index
    %123 = vector.load %arg1[%c456, %c0_42] : memref<696x192xf32, #tpu.memory_space<vmem>>, vector<32x64xf32>
    %cst_43 = arith.constant dense<0.000000e+00> : vector<20x64xf32>
    %124 = tpu.matmul %117, %123, %cst_43 {dimension_numbers = #tpu.dot_dimension_numbers<[1], [0], [0], [1], [0, 0, 1, 1], [], []>} : vector<20x32xf32>, vector<32x64xf32>, vector<20x64xf32> -> vector<20x64xf32>
    %c488 = arith.constant 488 : index
    %c0_44 = arith.constant 0 : index
    %125 = vector.load %arg1[%c488, %c0_44] : memref<696x192xf32, #tpu.memory_space<vmem>>, vector<1x64xf32>
    %126 = vector.broadcast %125 : vector<1x64xf32> to vector<20x64xf32>
    %127 = arith.addf %124, %126 : vector<20x64xf32>
    %128 = vector.extract_strided_slice %127 {offsets = [0, 0], sizes = [20, 32], strides = [1, 1]} : vector<20x64xf32> to vector<20x32xf32>
    %129 = vector.extract_strided_slice %127 {offsets = [0, 32], sizes = [20, 32], strides = [1, 1]} : vector<20x64xf32> to vector<20x32xf32>
    %cst_45 = arith.constant dense<0.000000e+00> : vector<2x20xf32>
    %130 = tpu.matmul %122, %128, %cst_45 {dimension_numbers = #tpu.dot_dimension_numbers<[1], [1], [0], [0], [0, 0, 1, 0], [], []>} : vector<2x32xf32>, vector<20x32xf32>, vector<2x20xf32> -> vector<2x20xf32>
    %cst_46 = arith.constant 0.176776692 : f32
    %131 = vector.broadcast %cst_46 : f32 to vector<2x20xf32>
    %132 = arith.mulf %130, %131 : vector<2x20xf32>
    %c688 = arith.constant 688 : index
    %c0_47 = arith.constant 0 : index
    %133 = vector.load %arg1[%c688, %c0_47] : memref<696x192xf32, #tpu.memory_space<vmem>>, vector<2x20xf32>
    %134 = arith.addf %132, %133 : vector<2x20xf32>
    %cst_48 = arith.constant dense<0xFF800000> : vector<2xf32>
    %135 = vector.multi_reduction <maximumf>, %134, %cst_48 [1] : vector<2x20xf32> to vector<2xf32>
    %136 = vector.shape_cast %135 : vector<2xf32> to vector<2x1xf32>
    %137 = vector.broadcast %136 : vector<2x1xf32> to vector<2x20xf32>
    %138 = arith.subf %134, %137 : vector<2x20xf32>
    %139 = math.exp %138 : vector<2x20xf32>
    %cst_49 = arith.constant dense<0.000000e+00> : vector<2xf32>
    %140 = vector.multi_reduction <add>, %139, %cst_49 [1] : vector<2x20xf32> to vector<2xf32>
    %141 = vector.shape_cast %140 : vector<2xf32> to vector<2x1xf32>
    %142 = tpu.reciprocal %141 {approx = true} : vector<2x1xf32> -> vector<2x1xf32>
    %143 = vector.broadcast %142 : vector<2x1xf32> to vector<2x20xf32>
    %144 = arith.mulf %139, %143 : vector<2x20xf32>
    %cst_50 = arith.constant dense<0.000000e+00> : vector<2x32xf32>
    %145 = tpu.matmul %144, %129, %cst_50 {dimension_numbers = #tpu.dot_dimension_numbers<[1], [0], [0], [1], [0, 0, 1, 1], [], []>} : vector<2x20xf32>, vector<20x32xf32>, vector<2x32xf32> -> vector<2x32xf32>
    %c496 = arith.constant 496 : index
    %c0_51 = arith.constant 0 : index
    %146 = vector.load %arg1[%c496, %c0_51] : memref<696x192xf32, #tpu.memory_space<vmem>>, vector<32x32xf32>
    %cst_52 = arith.constant dense<0.000000e+00> : vector<2x32xf32>
    %147 = tpu.matmul %145, %146, %cst_52 {dimension_numbers = #tpu.dot_dimension_numbers<[1], [0], [0], [1], [0, 0, 1, 1], [], []>} : vector<2x32xf32>, vector<32x32xf32>, vector<2x32xf32> -> vector<2x32xf32>
    %c528 = arith.constant 528 : index
    %c0_53 = arith.constant 0 : index
    %148 = vector.load %arg1[%c528, %c0_53] : memref<696x192xf32, #tpu.memory_space<vmem>>, vector<1x32xf32>
    %149 = vector.broadcast %148 : vector<1x32xf32> to vector<2x32xf32>
    %150 = arith.addf %147, %149 : vector<2x32xf32>
    %c536 = arith.constant 536 : index
    %c0_54 = arith.constant 0 : index
    %151 = vector.load %arg1[%c536, %c0_54] : memref<696x192xf32, #tpu.memory_space<vmem>>, vector<1x32xf32>
    %c544 = arith.constant 544 : index
    %c0_55 = arith.constant 0 : index
    %152 = vector.load %arg1[%c544, %c0_55] : memref<696x192xf32, #tpu.memory_space<vmem>>, vector<1x32xf32>
    %cst_56 = arith.constant dense<0.000000e+00> : vector<2xf32>
    %153 = vector.multi_reduction <add>, %150, %cst_56 [1] : vector<2x32xf32> to vector<2xf32>
    %154 = vector.shape_cast %153 : vector<2xf32> to vector<2x1xf32>
    %cst_57 = arith.constant 3.200000e+01 : f32
    %155 = vector.broadcast %cst_57 : f32 to vector<2x1xf32>
    %156 = arith.divf %154, %155 : vector<2x1xf32>
    %157 = vector.broadcast %156 : vector<2x1xf32> to vector<2x32xf32>
    %158 = arith.subf %150, %157 : vector<2x32xf32>
    %159 = arith.mulf %158, %158 : vector<2x32xf32>
    %cst_58 = arith.constant dense<0.000000e+00> : vector<2xf32>
    %160 = vector.multi_reduction <add>, %159, %cst_58 [1] : vector<2x32xf32> to vector<2xf32>
    %161 = vector.shape_cast %160 : vector<2xf32> to vector<2x1xf32>
    %cst_59 = arith.constant 3.200000e+01 : f32
    %162 = vector.broadcast %cst_59 : f32 to vector<2x1xf32>
    %163 = arith.divf %161, %162 : vector<2x1xf32>
    %cst_60 = arith.constant 9.99999974E-6 : f32
    %164 = vector.broadcast %cst_60 : f32 to vector<2x1xf32>
    %165 = arith.addf %163, %164 : vector<2x1xf32>
    %166 = math.rsqrt %165 : vector<2x1xf32>
    %167 = vector.broadcast %166 : vector<2x1xf32> to vector<2x32xf32>
    %168 = arith.mulf %158, %167 : vector<2x32xf32>
    %169 = vector.broadcast %151 : vector<1x32xf32> to vector<2x32xf32>
    %170 = arith.mulf %168, %169 : vector<2x32xf32>
    %171 = vector.broadcast %152 : vector<1x32xf32> to vector<2x32xf32>
    %172 = arith.addf %170, %171 : vector<2x32xf32>
    %173 = arith.addf %172, %116 : vector<2x32xf32>
    %c0_61 = arith.constant 0 : index
    %c0_62 = arith.constant 0 : index
    %174 = vector.load %arg3[%c0_61, %c0_62] : memref<2x32xf32, #tpu.memory_space<vmem>>, vector<2x32xf32>
    tpu.vector_store %arg3[%c0_61, %c0_62], %173 {strides = array<i32>} : memref<2x32xf32, #tpu.memory_space<vmem>>, vector<2x32xf32>,
    %c552 = arith.constant 552 : index
    %c0_63 = arith.constant 0 : index
    %175 = vector.load %arg1[%c552, %c0_63] : memref<696x192xf32, #tpu.memory_space<vmem>>, vector<32x32xf32>
    %cst_64 = arith.constant dense<0.000000e+00> : vector<2x32xf32>
    %176 = tpu.matmul %173, %175, %cst_64 {dimension_numbers = #tpu.dot_dimension_numbers<[1], [0], [0], [1], [0, 0, 1, 1], [], []>} : vector<2x32xf32>, vector<32x32xf32>, vector<2x32xf32> -> vector<2x32xf32>
    %c584 = arith.constant 584 : index
    %c0_65 = arith.constant 0 : index
    %177 = vector.load %arg1[%c584, %c0_65] : memref<696x192xf32, #tpu.memory_space<vmem>>, vector<1x32xf32>
    %178 = vector.broadcast %177 : vector<1x32xf32> to vector<2x32xf32>
    %179 = arith.addf %176, %178 : vector<2x32xf32>
    %cst_66 = arith.constant 0.000000e+00 : f32
    %180 = vector.broadcast %cst_66 : f32 to vector<2x32xf32>
    %181 = arith.maximumf %179, %180 : vector<2x32xf32>
    %c592 = arith.constant 592 : index
    %c0_67 = arith.constant 0 : index
    %182 = vector.load %arg1[%c592, %c0_67] : memref<696x192xf32, #tpu.memory_space<vmem>>, vector<32x32xf32>
    %cst_68 = arith.constant dense<0.000000e+00> : vector<2x32xf32>
    %183 = tpu.matmul %181, %182, %cst_68 {dimension_numbers = #tpu.dot_dimension_numbers<[1], [0], [0], [1], [0, 0, 1, 1], [], []>} : vector<2x32xf32>, vector<32x32xf32>, vector<2x32xf32> -> vector<2x32xf32>
    %c624 = arith.constant 624 : index
    %c0_69 = arith.constant 0 : index
    %184 = vector.load %arg1[%c624, %c0_69] : memref<696x192xf32, #tpu.memory_space<vmem>>, vector<1x32xf32>
    %185 = vector.broadcast %184 : vector<1x32xf32> to vector<2x32xf32>
    %186 = arith.addf %183, %185 : vector<2x32xf32>
    %cst_70 = arith.constant 0.000000e+00 : f32
    %187 = vector.broadcast %cst_70 : f32 to vector<2x32xf32>
    %188 = arith.maximumf %186, %187 : vector<2x32xf32>
    %c632 = arith.constant 632 : index
    %c0_71 = arith.constant 0 : index
    %189 = vector.load %arg1[%c632, %c0_71] : memref<696x192xf32, #tpu.memory_space<vmem>>, vector<1x32xf32>
    %c640 = arith.constant 640 : index
    %c0_72 = arith.constant 0 : index
    %190 = vector.load %arg1[%c640, %c0_72] : memref<696x192xf32, #tpu.memory_space<vmem>>, vector<1x32xf32>
    %cst_73 = arith.constant dense<0.000000e+00> : vector<2xf32>
    %191 = vector.multi_reduction <add>, %188, %cst_73 [1] : vector<2x32xf32> to vector<2xf32>
    %192 = vector.shape_cast %191 : vector<2xf32> to vector<2x1xf32>
    %cst_74 = arith.constant 3.200000e+01 : f32
    %193 = vector.broadcast %cst_74 : f32 to vector<2x1xf32>
    %194 = arith.divf %192, %193 : vector<2x1xf32>
    %195 = vector.broadcast %194 : vector<2x1xf32> to vector<2x32xf32>
    %196 = arith.subf %188, %195 : vector<2x32xf32>
    %197 = arith.mulf %196, %196 : vector<2x32xf32>
    %cst_75 = arith.constant dense<0.000000e+00> : vector<2xf32>
    %198 = vector.multi_reduction <add>, %197, %cst_75 [1] : vector<2x32xf32> to vector<2xf32>
    %199 = vector.shape_cast %198 : vector<2xf32> to vector<2x1xf32>
    %cst_76 = arith.constant 3.200000e+01 : f32
    %200 = vector.broadcast %cst_76 : f32 to vector<2x1xf32>
    %201 = arith.divf %199, %200 : vector<2x1xf32>
    %cst_77 = arith.constant 9.99999974E-6 : f32
    %202 = vector.broadcast %cst_77 : f32 to vector<2x1xf32>
    %203 = arith.addf %201, %202 : vector<2x1xf32>
    %204 = math.rsqrt %203 : vector<2x1xf32>
    %205 = vector.broadcast %204 : vector<2x1xf32> to vector<2x32xf32>
    %206 = arith.mulf %196, %205 : vector<2x32xf32>
    %207 = vector.broadcast %189 : vector<1x32xf32> to vector<2x32xf32>
    %208 = arith.mulf %206, %207 : vector<2x32xf32>
    %209 = vector.broadcast %190 : vector<1x32xf32> to vector<2x32xf32>
    %210 = arith.addf %208, %209 : vector<2x32xf32>
    %c648 = arith.constant 648 : index
    %c0_78 = arith.constant 0 : index
    %211 = vector.load %arg1[%c648, %c0_78] : memref<696x192xf32, #tpu.memory_space<vmem>>, vector<32x10xf32>
    %cst_79 = arith.constant dense<0.000000e+00> : vector<2x10xf32>
    %212 = tpu.matmul %210, %211, %cst_79 {dimension_numbers = #tpu.dot_dimension_numbers<[1], [0], [0], [1], [0, 0, 1, 1], [], []>} : vector<2x32xf32>, vector<32x10xf32>, vector<2x10xf32> -> vector<2x10xf32>
    %c680 = arith.constant 680 : index
    %c0_80 = arith.constant 0 : index
    %213 = vector.load %arg1[%c680, %c0_80] : memref<696x192xf32, #tpu.memory_space<vmem>>, vector<1x10xf32>
    %214 = vector.broadcast %213 : vector<1x10xf32> to vector<2x10xf32>
    %215 = arith.addf %212, %214 : vector<2x10xf32>
    %cst_81 = arith.constant dense<0xFF800000> : vector<2xf32>
    %216 = vector.multi_reduction <maximumf>, %215, %cst_81 [1] : vector<2x10xf32> to vector<2xf32>
    %217 = vector.shape_cast %216 : vector<2xf32> to vector<2x1xf32>
    %218 = vector.broadcast %217 : vector<2x1xf32> to vector<2x10xf32>
    %219 = arith.subf %215, %218 : vector<2x10xf32>
    %220 = math.exp %219 : vector<2x10xf32>
    %cst_82 = arith.constant dense<0.000000e+00> : vector<2xf32>
    %221 = vector.multi_reduction <add>, %220, %cst_82 [1] : vector<2x10xf32> to vector<2xf32>
    %222 = vector.shape_cast %221 : vector<2xf32> to vector<2x1xf32>
    %223 = math.log %222 : vector<2x1xf32>
    %224 = vector.broadcast %223 : vector<2x1xf32> to vector<2x10xf32>
    %225 = arith.subf %219, %224 : vector<2x10xf32>
    %c0_83 = arith.constant 0 : index
    %c0_84 = arith.constant 0 : index
    %226 = vector.load %arg2[%c0_83, %c0_84] : memref<2x10xf32, #tpu.memory_space<vmem>>, vector<2x10xf32>
    tpu.vector_store %arg2[%c0_83, %c0_84], %225 {strides = array<i32>} : memref<2x10xf32, #tpu.memory_space<vmem>>, vector<2x10xf32>,
    return
  }
}

</mosaic_0001>

<bundles_post_ra>
// kernel: simple_cross_attn_forward.1
= control target key start
LH: loop header
LB: loop body
LE: loop exit
PB: predicated region body
PF: predicated region fallthrough
CT: control target
= control target key end

     0   :  { %9 = vsyncpa [#allocation3], 0  ;;  %vm33_vm0 = vcmask 64512   ;;  %s2117_s0 = inlined_call_operand.vmem [shape: f32[36,8], index: 0, kind: input, shape index: {}]   ;;  %s2118_s1 = inlined_call_operand.vmem [shape: f32[696,192], index: 1, kind: input, shape index: {}]   ;;  %s2119_s2 = inlined_call_operand.hbm [shape: f32[2,10], index: 2, kind: output, shape index: {0}]   ;;  %s2120_s3 = inlined_call_operand.hbm [shape: f32[2,32], index: 3, kind: output, shape index: {1}]  }
   0x1   :  { %v31_v0 = vld [vmem:[%s2118_s1] sm:$0xff]  ;;  %v123_v3 = vld [vmem:[%s2118_s1 + $0xa8] sm:$0xff] }
   0x2   :  { %v26_v1 = vld [vmem:[%s2117_s0] sm:$0xff]  ;;  %64 = vmatpush.msra.mxu0 %v31_v0  ;;  %191 = vmatpush.msra.mxu2 %v123_v3 }
   0x3   :  { %1360 = vmatmul.msk.f32.vlgmr.msra.gmra.mxu0 %vm33_vm0, %v26_v1  ;;  %v122_v2 = vld [vmem:[%s2118_s1 + $0xa0] sm:$0xff] }
   0x4   :  { %159 = vmatpush.msra.mxu1 %v122_v2 }
   0x5   :  { %10 = vsyncpa [#allocation5], 0  ;;  %v27_v4 = vld [vmem:[%s2117_s0 + $0x8] sm:$0xff]  ;;  %v28_v5 = vld [vmem:[%s2117_s0 + $0x10] sm:$0xff]  ;;  %vm131_vm1 = vcmask 261120   ;;  %s1548_s18 = smov 96  }
   0x6   :  { %v29_v6 = vld [vmem:[%s2117_s0 + $0x18] sm:$0xff]  ;;  %v30_v7 = vld [vmem:[%s2117_s0 + $0x20] sm:$0xf]  ;;  %v120_v8 = vld [vmem:[%s2118_s1 + $0x90] sm:$0xff]  ;;  %s1549_s27 = smov 32   ;;  %vm348_vm2 = vcmask 293888  }
   0x7   :  { %v121_v9 = vld [vmem:[%s2118_s1 + $0x98] sm:$0xff]  ;;  %160 = vmatpush.msra.mxu1 %v120_v8  ;;  %v118_v10 = vld [vmem:[%s2118_s1 + $0x80] sm:$0xff]  ;;  %v119_v11 = vld [vmem:[%s2118_s1 + $0x88] sm:$0xff]  ;;  %vm361_vm3 = vcmask 289792   ;;  %s1550_s10 = smov 64   ;;  %vm434_vm4 = vcmask 1043456  }
   0x8   :  { %192 = vmatpush.msra.mxu2 %v121_v9  ;;  %v116_v12 = vld [vmem:[%s2118_s1 + $0x70] sm:$0xff]  ;;  %v117_v13 = vld [vmem:[%s2118_s1 + $0x78] sm:$0xff]  ;;  %v106_v16 = vld [vmem:[%s2118_s1 + $0x20] sm:$0xff]  ;;  %vm573_vm5 = vcmask 257024   ;;  %s1552_s14 = smov [#allocation4]   ;;  %s1553_s19 = smov [#allocation2]  }
   0x9   :  { %161 = vmatpush.msra.mxu1 %v118_v10  ;;  %v32_v14 = vld [vmem:[%s2118_s1 + $0x10] ss:$0 sm:$0xff]  ;;  %v108_v29 = vld [vmem:[%s2118_s1 + $0x40] sm:$0xff]  ;;  %s1344_s15 = sshll.u32 %s1552_s14, 4  ;;  %s1333_s20 = sshll.u32 %s1553_s19, 4  ;;  %s1345_s15 = int_to_ptr.vmem [resolvable:$true] %s1344_s15  ;;  %s1334_s20 = int_to_ptr.vmem [resolvable:$true] %s1333_s20 }
   0xa   :  { %193 = vmatpush.msra.mxu2 %v119_v11  ;;  %v107_v20 = vld [vmem:[%s2118_s1 + $0x30] sm:$0xff]  ;;  %v110_v37 = vld [vmem:[%s2118_s1 + $0x60] sm:$0xf]  ;;  %s1335_s23 = sshll.u32 %s2119_s2, 4  ;;  %s1336_s23 = int_to_ptr.hbm [resolvable:$true] %s1335_s23 }
   0xb   :  { %1361 = vmatmul.msk.f32.gmra.mxu0 %vm33_vm0, %v27_v4  ;;  %162 = vmatpush.msra.mxu1 %v116_v12  ;;  %v109_v33 = vld [vmem:[%s2118_s1 + $0x50] sm:$0xff]  ;;  %v339_v12 = vld [vmem:[%s2118_s1 + $0x300] sm:$0xff] }
   0xc   :  { %194 = vmatpush.msra.mxu2 %v117_v13  ;;  %v1365_v41 = vld [vmem:[%s2118_s1 + $0xb0] ss:$8 sm:$0x3] }
   0xd   :  { %v128_v42 = vperm.slane %v1365_v41, 1  ;;  %v127_v53 = vperm.slane %v1365_v41, 0 }
  0x13   :  { %1362 = vmatmul.msk.f32.gmra.mxu0 %vm33_vm0, %v28_v5 }
  0x1b   :  { %1363 = vmatmul.msk.f32.gmra.mxu0 %vm33_vm0, %v29_v6 }
  0x23   :  { %1364 = vmatmul.msk.f32.gmra.mxu0 %vm33_vm0, %v30_v7  ;;  %v338_v7 = vld [vmem:[%s2118_s1 + $0x2f0] sm:$0xff] }
  0x80   :  { %v66_v15 = vpop.f32.mrf.mxu0 }
  0x81   :  { %v67_v17 = vadd.f32 %v66_v15, %v32_v14 }
  0x83   :  { %v1622_v18 = vadd.f32 %v106_v16, %v67_v17  ;;  %v340_v17 = vld [vmem:[%s2118_s1 + $0x310] sm:$0xff] }
  0x85   :  { %1366 = vmatmul.msk.f32.vlgmr.msra.gmra.mxu1 %vm131_vm1, %v1622_v18  ;;  %1371 = vmatmul.msk.f32.vlgmr.msra.gmra.mxu2 %vm131_vm1, %v1622_v18 }
  0x88   :  { %v69_v19 = vpop.f32.mrf.mxu0 }
  0x89   :  { %v70_v21 = vadd.f32 %v69_v19, %v32_v14 }
  0x8b   :  { %v1631_v22 = vadd.f32 %v107_v20, %v70_v21 }
  0x8d   :  { %1367 = vmatmul.msk.f32.gmra.mxu1 %vm131_vm1, %v1631_v22  ;;  %1372 = vmatmul.msk.f32.gmra.mxu2 %vm131_vm1, %v1631_v22 }
  0x90   :  { %v72_v23 = vpop.f32.mrf.mxu0 }
  0x91   :  { %v73_v24 = vadd.f32 %v72_v23, %v32_v14 }
  0x93   :  { %90 = vrot.lane.b32.xlu0 %v73_v24, %s1548_s18  ;;  %v341_v24 = vld [vmem:[%s2118_s1 + $0x320] sm:$0xff] }
  0x98   :  { %v75_v25 = vpop.f32.mrf.mxu0 }
  0x99   :  { %v76_v26 = vadd.f32 %v75_v25, %v32_v14 }
  0x9b   :  { %92 = vrot.lane.b32.xlu0 %v76_v26, %s1548_s18 }
  0xa0   :  { %v78_v27 = vpop.f32.mrf.mxu0 }
  0xa1   :  { %v79_v28 = vadd.f32 %v78_v27, %v32_v14 }
  0xa3   :  { %94 = vrot.lane.b32.xlu1 %v79_v28, %s1548_s18 }
 0x102   :  { %v164_v48 = vpop.f32.mrf.mxu1 }
 0x103   :  { %v1674_v54 = vadd.f32 %v164_v48, %v127_v53 }
 0x105   :  { %v91_v30 = vpop.permute.xlu0 %90 }
 0x106   :  { %v1643_v31 = vadd.f32 %v108_v29, %v91_v30  ;;  %v342_v29 = vld [vmem:[%s2118_s1 + $0x330] sm:$0xf] }
 0x108   :  { %1368 = vmatmul.msk.f32.gmra.mxu1 %vm131_vm1, %v1643_v31  ;;  %v196_v32 = vpop.f32.mrf.mxu2  ;;  %1373 = vmatmul.msk.f32.gmra.mxu2 %vm131_vm1, %v1643_v31 }
 0x10a   :  { %v167_v49 = vpop.f32.mrf.mxu1 }
 0x10b   :  { %v1683_v60 = vadd.f32 %v167_v49, %v127_v53 }
 0x10d   :  { %v93_v34 = vpop.permute.xlu0 %92 }
 0x10e   :  { %v1652_v35 = vadd.f32 %v109_v33, %v93_v34 }
 0x110   :  { %1369 = vmatmul.msk.f32.gmra.mxu1 %vm131_vm1, %v1652_v35  ;;  %v199_v36 = vpop.f32.mrf.mxu2  ;;  %1374 = vmatmul.msk.f32.gmra.mxu2 %vm131_vm1, %v1652_v35 }
 0x115   :  { %v95_v38 = vpop.permute.xlu1 %94 }
 0x116   :  { %v1661_v39 = vadd.f32 %v110_v37, %v95_v38 }
 0x118   :  { %1370 = vmatmul.msk.f32.gmra.mxu1 %vm131_vm1, %v1661_v39  ;;  %1375 = vmatmul.msk.f32.gmra.mxu2 %vm131_vm1, %v1661_v39 }
 0x185   :  { %v170_v50 = vpop.f32.mrf.mxu1 }
 0x186   :  { %v171_v57 = vadd.f32 %v170_v50, %v127_v53  ;;  %v1432_v50 = vpack.i.bf16 %v1674_v54, %v1683_v60 }
 0x18b   :  { %v202_v40 = vpop.f32.mrf.mxu2 }
 0x18c   :  { %v203_v46 = vadd.f32 %v202_v40, %v128_v42 }
 0x18d   :  { %v173_v52 = vpop.f32.mrf.mxu1 }
 0x18e   :  { %v174_v61 = vadd.f32 %v173_v52, %v127_v53 }
 0x193   :  { %v205_v43 = vpop.f32.mrf.mxu2 }
 0x194   :  { %v206_v44 = vadd.f32 %v205_v43, %v128_v42 }
 0x195   :  { %v176_v56 = vpop.f32.mrf.mxu1 }
 0x196   :  { %247 = vrot.lane.b32.xlu2 %v206_v44, %s1549_s27  ;;  %v177_v58 = vadd.f32 %v176_v56, %v127_v53 }
 0x19b   :  { %v208_v45 = vpop.f32.mrf.mxu2 }
 0x19c   :  { %v209_v47 = vadd.f32 %v208_v45, %v128_v42 }
 0x19e   :  { %249 = vrot.lane.b32.xlu1 %v209_v47, %s1549_s27  ;;  %245 = vrot.lane.b32.xlu2 %v203_v46, %s1549_s27 }
 0x1f0   :  { %v1670_v51 = vpop.permute.xlu2 %247 }
 0x1f1   :  { %272 = vrot.lane.b32.xlu1 %v1670_v51, %s1548_s18 }
 0x1f8   :  { %v1676_v55 = vpop.permute.xlu2 %245 }
 0x1f9   :  { %270 = vrot.lane.b32.xlu2 %v1676_v55, %s1548_s18  ;;  %266 = vrot.lane.b32.xlu1 %v1674_v54, %s1548_s18  ;;  %v1427_v34 = vpack.i.bf16 %v1676_v55, %v1670_v51 }
 0x201   :  { %220 = vrot.lane.b32.xlu2 %v171_v57, %s1549_s27  ;;  %224 = vrot.lane.b32.xlu1 %v177_v58, %s1549_s27 }
 0x210   :  { %v250_v59 = vpop.permute.xlu1 %249 }
 0x211   :  { %274 = vrot.lane.b32.xlu0 %v250_v59, %s1548_s18 }
 0x219   :  { %268 = vrot.lane.b32.xlu0 %v1683_v60, %s1548_s18 }
 0x221   :  { %222 = vrot.lane.b32.xlu0 %v174_v61, %s1549_s27 }
 0x253   :  { %v271_v0 = vpop.permute.xlu2 %270 }
 0x25b   :  { %v221_v3 = vpop.permute.xlu2 %220 }
 0x263   :  { %v273_v63 = vpop.permute.xlu1 %272 }
 0x26b   :  { %v267_v2 = vpop.permute.xlu1 %266 }
 0x273   :  { %v225_v5 = vpop.permute.xlu1 %224 }
 0x283   :  { %v275_v62 = vpop.permute.xlu0 %274 }
 0x284   :  { %1376 = vmatpush.xpose.msk.msra.mxu3 %vm131_vm1, %v275_v62 }
 0x288   :  { %1377 = vmatpush.xpose.msk.msra.mxu3 %vm131_vm1, %v273_v63 }
 0x28b   :  { %v269_v1 = vpop.permute.xlu0 %268 }
 0x28c   :  { %1378 = vmatpush.xpose.msk.msra.mxu3 %vm131_vm1, %v271_v0 }
 0x290   :  { %1379 = vmatpush.xpose.msk.msra.mxu3 %vm131_vm1, %v269_v1 }
 0x293   :  { %v223_v4 = vpop.permute.xlu0 %222 }
 0x294   :  { %1380 = vmatpush.xpose.msk.msra.mxu3 %vm131_vm1, %v267_v2 }
 0x297   :  { %1381 = vmatmul.msk.f32.vlgmr.msra.gmra.mxu3 %vm131_vm1, %v1674_v54 }
 0x29f   :  { %1382 = vmatmul.msk.f32.gmra.mxu3 %vm131_vm1, %v1683_v60 }
 0x2a7   :  { %1383 = vmatmul.msk.f32.gmra.mxu3 %vm131_vm1, %v221_v3 }
 0x2af   :  { %1384 = vmatmul.msk.f32.gmra.mxu3 %vm131_vm1, %v223_v4 }
 0x2b7   :  { %1385 = vmatmul.msk.f32.gmra.mxu3 %vm131_vm1, %v225_v5 }
 0x31a   :  { %v318_v6 = vpop.f32.mrf.mxu3 }
 0x31b   :  { %v333_v8 = vmul.f32 0.17677669, %v318_v6 }
 0x31d   :  { %v343_v9 = vadd.f32 %v338_v7, %v333_v8 }
 0x31f   :  { %v349_v10 = vsel %vm348_vm2, %v343_v9, -inf }
 0x320   :  { %350 = vmax.xlane.f32.xlu2 %v349_v10 }
 0x322   :  { %v321_v11 = vpop.f32.mrf.mxu3 }
 0x323   :  { %v334_v13 = vmul.f32 0.17677669, %v321_v11 }
 0x325   :  { %v344_v14 = vadd.f32 %v339_v12, %v334_v13  ;;  %v472_v12 = vld [vmem:[%s2118_s1 + $0xf0] sm:$0xff]  ;;  %v471_v13 = vld [vmem:[%s2118_s1 + $0xe0] sm:$0xff] }
 0x326   :  { %501 = vmatpush.msrb.mxu1 %v472_v12 }
 0x327   :  { %v352_v15 = vsel %vm348_vm2, %v344_v14, -inf }
 0x328   :  { %353 = vmax.xlane.f32.xlu0 %v352_v15  ;;  %502 = vmatpush.msrb.mxu1 %v471_v13 }
 0x32a   :  { %v324_v16 = vpop.f32.mrf.mxu3 }
 0x32b   :  { %v335_v19 = vmul.f32 0.17677669, %v324_v16 }
 0x32d   :  { %v345_v20 = vadd.f32 %v340_v17, %v335_v19 }
 0x32f   :  { %v355_v21 = vsel %vm348_vm2, %v345_v20, -inf }
 0x330   :  { %356 = vmax.xlane.f32.xlu1 %v355_v21 }
 0x332   :  { %v327_v23 = vpop.f32.mrf.mxu3 }
 0x333   :  { %v336_v25 = vmul.f32 0.17677669, %v327_v23 }
 0x335   :  { %v346_v26 = vadd.f32 %v341_v24, %v336_v25 }
 0x337   :  { %v358_v27 = vsel %vm348_vm2, %v346_v26, -inf }
 0x338   :  { %359 = vmax.xlane.f32.xlu2 %v358_v27 }
 0x33a   :  { %v330_v28 = vpop.f32.mrf.mxu3 }
 0x33b   :  { %v337_v30 = vmul.f32 0.17677669, %v330_v28 }
 0x33d   :  { %v347_v32 = vadd.f32 %v342_v29, %v337_v30 }
 0x33f   :  { %v362_v33 = vsel %vm361_vm3, %v347_v32, -inf }
 0x340   :  { %363 = vmax.xlane.f32.xlu2 %v362_v33 }
 0x349   :  { %413 = vrot.lane.b32.xlu1 %v250_v59, %s1550_s10 }
 0x358   :  { %1428 = vrot.lane.b32.xlu2 %v1427_v34, %s1550_s10 }
 0x393   :  { %v351_v36 = vpop.xlane.xlu2 %350 }
 0x394   :  { %v365_v37 = vsub.f32 %v343_v9, %v351_v36  ;;  %v473_v36 = vld [vmem:[%s2118_s1 + $0x100] ss:$0 sm:$0xff] }
 0x396   :  { %v370_v38 = vmul.f32 1.442695, %v365_v37 }
 0x398   :  { %1442 = vpow2.f32 %v370_v38 }
 0x39b   :  { %v354_v40 = vpop.xlane.xlu0 %353 }
 0x39c   :  { %v366_v41 = vsub.f32 %v344_v14, %v354_v40  ;;  %v470_v14 = vld [vmem:[%s2118_s1 + $0xd0] sm:$0xff] }
 0x39d   :  { %503 = vmatpush.msrb.mxu1 %v470_v14 }
 0x39e   :  { %v1443_v42 = vpop.eup %1442  ;;  %v372_v43 = vmul.f32 1.442695, %v366_v41 }
 0x39f   :  { %v380_v44 = vsel %vm348_vm2, %v1443_v42, 0.0 }
 0x3a0   :  { %1444 = vpow2.f32 %v372_v43  ;;  %381 = vadd.xlane.f32.xlu0 %v380_v44 }
 0x3a3   :  { %v357_v51 = vpop.xlane.xlu1 %356 }
 0x3a4   :  { %v367_v60 = vsub.f32 %v345_v20, %v357_v51 }
 0x3a6   :  { %v1445_v45 = vpop.eup %1444  ;;  %v374_v0 = vmul.f32 1.442695, %v367_v60 }
 0x3a7   :  { %v383_v46 = vsel %vm348_vm2, %v1445_v45, 0.0 }
 0x3a8   :  { %384 = vadd.xlane.f32.xlu1 %v383_v46 }
 0x3ab   :  { %v360_v47 = vpop.xlane.xlu2 %359 }
 0x3ac   :  { %v368_v48 = vsub.f32 %v346_v26, %v360_v47  ;;  %v469_v26 = vld [vmem:[%s2118_s1 + $0xc0] sm:$0xff] }
 0x3ad   :  { %504 = vmatpush.msrb.mxu1 %v469_v26  ;;  %v690_v26 = vld [vmem:[%s2118_s1 + $0x1c0] sm:$0xff] }
 0x3ae   :  { %v376_v49 = vmul.f32 1.442695, %v368_v48 }
 0x3b0   :  { %1446 = vpow2.f32 %v376_v49 }
 0x3b3   :  { %v364_v52 = vpop.xlane.xlu2 %363 }
 0x3b4   :  { %v369_v53 = vsub.f32 %v347_v32, %v364_v52  ;;  %1433 = vrot.lane.b32.xlu0 %v1432_v50, %s1550_s10 }
 0x3b6   :  { %v1447_v55 = vpop.eup %1446  ;;  %v378_v56 = vmul.f32 1.442695, %v369_v53 }
 0x3b7   :  { %v389_v57 = vsel %vm348_vm2, %v1447_v55, 0.0 }
 0x3b8   :  { %1448 = vpow2.f32 %v378_v56  ;;  %390 = vadd.xlane.f32.xlu2 %v389_v57  ;;  %v1551_v57 = vmov 32.0  }
 0x3b9   :  { %1450 = vpow2.f32 %v374_v0 }
 0x3bb   :  { %v1429_v58 = vpop.permute.xlu2 %1428  ;;  %v414_v59 = vpop.permute.xlu1 %413 }
 0x3bc   :  { %1386 = vmatpush.msk.msrb.mxu0 %vm434_vm4, %v414_v59  ;;  %v1430_v61 = vunpack.i.l.bf16 %v1429_v58  ;;  %v1431_v63 = vunpack.i.h.bf16 %v1429_v58 }
 0x3be   :  { %v1449_v62 = vpop.eup %1448  ;;  %449 = vmatpush.msrb.mxu0 %v1430_v61 }
 0x3bf   :  { %v392_v54 = vsel %vm361_vm3, %v1449_v62, 0.0  ;;  %v1451_v1 = vpop.eup %1450 }
 0x3c0   :  { %393 = vadd.xlane.f32.xlu1 %v392_v54  ;;  %450 = vmatpush.msrb.mxu0 %v1431_v63  ;;  %v386_v2 = vsel %vm348_vm2, %v1451_v1, 0.0 }
 0x3de   :  { %387 = vadd.xlane.f32.xlu0 %v386_v2 }
 0x413   :  { %v382_v3 = vpop.xlane.xlu0 %381 }
 0x414   :  { %1452 = vrcp.f32 %v382_v3 }
 0x41a   :  { %v1453_v6 = vpop.eup %1452 }
 0x41b   :  { %v385_v4 = vpop.xlane.xlu1 %384  ;;  %v400_v9 = vmul.f32 %v1453_v6, %v1443_v42 }
 0x41c   :  { %1454 = vrcp.f32 %v385_v4 }
 0x422   :  { %v1455_v10 = vpop.eup %1454 }
 0x423   :  { %v401_v11 = vmul.f32 %v1455_v10, %v1445_v45 }
 0x426   :  { %v1434_v5 = vpop.permute.xlu0 %1433 }
 0x427   :  { %v1435_v7 = vunpack.i.l.bf16 %v1434_v5  ;;  %v1436_v8 = vunpack.i.h.bf16 %v1434_v5 }
 0x429   :  { %451 = vmatpush.msrb.mxu0 %v1435_v7 }
 0x42b   :  { %452 = vmatpush.msrb.mxu0 %v1436_v8  ;;  %v391_v16 = vpop.xlane.xlu2 %390 }
 0x42c   :  { %1387 = vmatmul.msk.f32.vlgmr.msrb.gmra.mxu0 %vm348_vm2, %v400_v9 }
 0x433   :  { %v394_v20 = vpop.xlane.xlu1 %393 }
 0x434   :  { %1388 = vmatmul.msk.f32.gmra.mxu0 %vm348_vm2, %v401_v11 }
 0x451   :  { %v388_v15 = vpop.xlane.xlu0 %387 }
 0x452   :  { %1456 = vrcp.f32 %v388_v15 }
 0x453   :  { %1458 = vrcp.f32 %v391_v16 }
 0x454   :  { %1460 = vrcp.f32 %v394_v20 }
 0x455   :  { %1462 = vrcp.f32 %v1551_v57 }
 0x458   :  { %v1457_v17 = vpop.eup %1456 }
 0x459   :  { %v402_v19 = vmul.f32 %v1457_v17, %v1451_v1  ;;  %v1459_v21 = vpop.eup %1458 }
 0x45a   :  { %v403_v23 = vmul.f32 %v1459_v21, %v1447_v55  ;;  %v1461_v24 = vpop.eup %1460 }
 0x45b   :  { %1389 = vmatmul.msk.f32.gmra.mxu0 %vm348_vm2, %v402_v19  ;;  %v404_v25 = vmul.f32 %v1461_v24, %v1449_v62  ;;  %v1463_v59 = vpop.eup %1462  ;;  %v692_v24 = vld [vmem:[%s2118_s1 + $0x1e0] sm:$0xff] }
 0x45c   :  { %vm582_vm6 = vweird.f32 %v1463_v59  ;;  %721 = vmatpush.msrb.mxu2 %v692_v24  ;;  %v558_v24 = vld [vmem:[%s2118_s1 + $0x180] sm:$0xff] }
 0x463   :  { %1390 = vmatmul.msk.f32.gmra.mxu0 %vm348_vm2, %v403_v23 }
 0x46b   :  { %1391 = vmatmul.msk.f32.gmra.mxu0 %vm348_vm2, %v404_v25  ;;  %v691_v25 = vld [vmem:[%s2118_s1 + $0x1d0] sm:$0xff] }
 0x46c   :  { %722 = vmatpush.msrb.mxu2 %v691_v25 }
 0x46e   :  { %723 = vmatpush.msrb.mxu2 %v690_v26 }
 0x4a9   :  { %v454_v27 = vpop.f32.mrf.mxu0 }
 0x4aa   :  { %1392 = vmatmul.msk.f32.vlgmr.msrb.gmra.mxu1 %vm131_vm1, %v454_v27  ;;  %v689_v27 = vld [vmem:[%s2118_s1 + $0x1b0] sm:$0xff] }
 0x4ab   :  { %724 = vmatpush.msrb.mxu2 %v689_v27 }
 0x4b1   :  { %v457_v28 = vpop.f32.mrf.mxu0 }
 0x4b2   :  { %1393 = vmatmul.msk.f32.gmra.mxu1 %vm131_vm1, %v457_v28 }
 0x4d8   :  { %v460_v29 = vpop.f32.mrf.mxu0 }
 0x4d9   :  { %1394 = vmatmul.msk.f32.gmra.mxu1 %vm131_vm1, %v460_v29 }
 0x4e0   :  { %v463_v30 = vpop.f32.mrf.mxu0 }
 0x4e1   :  { %1395 = vmatmul.msk.f32.gmra.mxu1 %vm131_vm1, %v463_v30 }
 0x4e8   :  { %v466_v32 = vpop.f32.mrf.mxu0 }
 0x4e9   :  { %1396 = vmatmul.msk.f32.gmra.mxu1 %vm131_vm1, %v466_v32 }
 0x527   :  { %v506_v33 = vpop.f32.mrf.mxu1 }
 0x528   :  { %v507_v44 = vadd.f32 %v506_v33, %v473_v36 }
 0x52a   :  { %v546_v45 = vadd.f32 %v507_v44, %v1622_v18 }
 0x52c   :  { %v561_v47 = vsel %vm131_vm1, %v546_v45, 0.0 }
 0x52f   :  { %v509_v34 = vpop.f32.mrf.mxu1 }
 0x530   :  { %v510_v46 = vadd.f32 %v509_v34, %v473_v36 }
 0x532   :  { %v547_v48 = vadd.f32 %v510_v46, %v1631_v22 }
 0x534   :  { %v564_v49 = vsel %vm131_vm1, %v547_v48, 0.0 }
 0x556   :  { %v512_v37 = vpop.f32.mrf.mxu1 }
 0x557   :  { %v513_v38 = vadd.f32 %v512_v37, %v473_v36 }
 0x559   :  { %530 = vrot.lane.b32.xlu0 %v513_v38, %s1548_s18 }
 0x55e   :  { %v515_v40 = vpop.f32.mrf.mxu1 }
 0x55f   :  { %v516_v41 = vadd.f32 %v515_v40, %v473_v36 }
 0x561   :  { %532 = vrot.lane.b32.xlu2 %v516_v41, %s1548_s18 }
 0x566   :  { %v518_v42 = vpop.f32.mrf.mxu1 }
 0x567   :  { %v519_v43 = vadd.f32 %v518_v42, %v473_v36 }
 0x569   :  { %534 = vrot.lane.b32.xlu1 %v519_v43, %s1548_s18 }
 0x583   :  { %562 = vadd.xlane.f32.xlu0 %v561_v47  ;;  %v551_v47 = vld [vmem:[%s2118_s1 + $0x110] sm:$0xff] }
 0x58a   :  { %565 = vadd.xlane.f32.xlu2 %v564_v49 }
 0x5bb   :  { %v533_v50 = vpop.permute.xlu2 %532 }
 0x5bc   :  { %v549_v51 = vadd.f32 %v533_v50, %v1652_v35  ;;  %v578_v35 = vmul.f32 32.0, %v1463_v59  ;;  %v556_v50 = vld [vmem:[%s2118_s1 + $0x160] sm:$0xff] }
 0x5be   :  { %v570_v52 = vsel %vm131_vm1, %v549_v51, 0.0  ;;  %v579_v61 = vsub.f32 1.0, %v578_v35 }
 0x5bf   :  { %571 = vadd.xlane.f32.xlu0 %v570_v52 }
 0x5c0   :  { %v580_v62 = vmul.f32 %v1463_v59, %v579_v61 }
 0x5c2   :  { %v581_v63 = vadd.f32 %v1463_v59, %v580_v62 }
 0x5c4   :  { %v1767_v54 = vsel %vm582_vm6, %v1463_v59, %v581_v63 }
 0x5cb   :  { %v531_v53 = vpop.permute.xlu0 %530 }
 0x5cc   :  { %v548_v55 = vadd.f32 %v531_v53, %v1643_v31 }
 0x5ce   :  { %v567_v18 = vsel %vm131_vm1, %v548_v55, 0.0 }
 0x5cf   :  { %568 = vadd.xlane.f32.xlu1 %v567_v18 }
 0x5db   :  { %v535_v56 = vpop.permute.xlu1 %534 }
 0x5dc   :  { %v550_v22 = vadd.f32 %v535_v56, %v1661_v39  ;;  %v552_v56 = vld [vmem:[%s2118_s1 + $0x120] sm:$0xff] }
 0x5de   :  { %v574_v58 = vsel %vm573_vm5, %v550_v22, 0.0 }
 0x5df   :  { %575 = vadd.xlane.f32.xlu2 %v574_v58 }
 0x5f6   :  { %v563_v31 = vpop.xlane.xlu0 %562 }
 0x5f7   :  { %v584_v60 = vmul.f32 %v1767_v54, %v563_v31 }
 0x5f9   :  { %v589_v0 = vsub.f32 %v546_v45, %v584_v60 }
 0x5fb   :  { %v594_v1 = vmul.f32 %v589_v0, %v589_v0 }
 0x5fd   :  { %v566_v2 = vpop.xlane.xlu2 %565  ;;  %v599_v3 = vsel %vm131_vm1, %v594_v1, 0.0 }
 0x5fe   :  { %v585_v39 = vmul.f32 %v1767_v54, %v566_v2  ;;  %600 = vadd.xlane.f32.xlu0 %v599_v3 }
 0x600   :  { %v1772_v4 = vsub.f32 %v547_v48, %v585_v39 }
 0x602   :  { %v595_v5 = vmul.f32 %v1772_v4, %v1772_v4 }
 0x604   :  { %v602_v6 = vsel %vm131_vm1, %v595_v5, 0.0  ;;  %v774_v5 = vld [vmem:[%s2118_s1 + $0x230] sm:$0xff] }
 0x605   :  { %603 = vadd.xlane.f32.xlu1 %v602_v6  ;;  %803 = vmatpush.msrb.mxu3 %v774_v5 }
 0x632   :  { %v572_v7 = vpop.xlane.xlu0 %571 }
 0x633   :  { %v587_v8 = vmul.f32 %v1767_v54, %v572_v7 }
 0x635   :  { %v1778_v9 = vsub.f32 %v549_v51, %v587_v8 }
 0x637   :  { %v597_v10 = vmul.f32 %v1778_v9, %v1778_v9 }
 0x639   :  { %v608_v11 = vsel %vm131_vm1, %v597_v10, 0.0 }
 0x63a   :  { %609 = vadd.xlane.f32.xlu0 %v608_v11 }
 0x642   :  { %v569_v12 = vpop.xlane.xlu1 %568 }
 0x643   :  { %v586_v13 = vmul.f32 %v1767_v54, %v569_v12 }
 0x645   :  { %v1784_v14 = vsub.f32 %v548_v55, %v586_v13 }
 0x647   :  { %v596_v15 = vmul.f32 %v1784_v14, %v1784_v14 }
 0x649   :  { %v605_v16 = vsel %vm131_vm1, %v596_v15, 0.0 }
 0x64a   :  { %606 = vadd.xlane.f32.xlu2 %v605_v16 }
 0x652   :  { %v576_v17 = vpop.xlane.xlu2 %575 }
 0x653   :  { %v588_v19 = vmul.f32 %v1767_v54, %v576_v17 }
 0x655   :  { %v1790_v20 = vsub.f32 %v550_v22, %v588_v19  ;;  %v557_v22 = vld [vmem:[%s2118_s1 + $0x170] sm:$0xff] }
 0x656   :  { %v553_v19 = vld [vmem:[%s2118_s1 + $0x130] sm:$0xff] }
 0x657   :  { %v598_v21 = vmul.f32 %v1790_v20, %v1790_v20 }
 0x659   :  { %v611_v23 = vsel %vm573_vm5, %v598_v21, 0.0 }
 0x65a   :  { %612 = vadd.xlane.f32.xlu1 %v611_v23 }
 0x671   :  { %v601_v28 = vpop.xlane.xlu0 %600 }
 0x672   :  { %v614_v29 = vmul.f32 %v601_v28, %v1767_v54 }
 0x674   :  { %v619_v30 = vadd.f32 1e-05, %v614_v29 }
 0x676   :  { %1464 = vrsqrt.f32 %v619_v30  ;;  %vm630_vm8 = vweird.f32 %v619_v30 }
 0x678   :  { %v604_v32 = vpop.xlane.xlu1 %603 }
 0x679   :  { %v615_v33 = vmul.f32 %v604_v32, %v1767_v54 }
 0x67b   :  { %v620_v34 = vadd.f32 1e-05, %v615_v33 }
 0x67c   :  { %v1465_v36 = vpop.eup %1464 }
 0x67d   :  { %v625_v37 = vmul.f32 %v1465_v36, %v619_v30  ;;  %1466 = vrsqrt.f32 %v620_v34  ;;  %vm631_vm7 = vweird.f32 %v1465_v36  ;;  %vm640_vm11 = vweird.f32 %v620_v34  ;;  %v554_v30 = vld [vmem:[%s2118_s1 + $0x140] sm:$0xff] }
 0x67e   :  { %vm632_vm9 = vmor %vm630_vm8, %vm631_vm7 }
 0x67f   :  { %v626_v38 = vmul.f32 %v1465_v36, %v625_v37 }
 0x681   :  { %v627_v40 = vmul.f32 0.5, %v626_v38 }
 0x683   :  { %v1467_v41 = vpop.eup %1466  ;;  %v628_v42 = vsub.f32 1.5, %v627_v40  ;;  %v555_v40 = vld [vmem:[%s2118_s1 + $0x150] sm:$0xf] }
 0x684   :  { %v635_v43 = vmul.f32 %v1467_v41, %v620_v34  ;;  %vm641_vm10 = vweird.f32 %v1467_v41  ;;  %v559_v34 = vld [vmem:[%s2118_s1 + $0x190] sm:$0xff] }
 0x685   :  { %v629_v44 = vmul.f32 %v1465_v36, %v628_v42  ;;  %vm642_vm12 = vmor %vm640_vm11, %vm641_vm10  ;;  %v560_v42 = vld [vmem:[%s2118_s1 + $0x1a0] sm:$0xf] }
 0x686   :  { %v636_v45 = vmul.f32 %v1467_v41, %v635_v43 }
 0x687   :  { %v633_v46 = vsel %vm632_vm9, %v1465_v36, %v629_v44 }
 0x688   :  { %v674_v48 = vmul.f32 %v633_v46, %v589_v0  ;;  %v637_v49 = vmul.f32 0.5, %v636_v45  ;;  %v773_v45 = vld [vmem:[%s2118_s1 + $0x220] sm:$0xff]  ;;  %v772_v46 = vld [vmem:[%s2118_s1 + $0x210] sm:$0xff] }
 0x689   :  { %804 = vmatpush.msrb.mxu3 %v773_v45 }
 0x68a   :  { %v638_v51 = vsub.f32 1.5, %v637_v49  ;;  %v679_v52 = vmul.f32 %v674_v48, %v551_v47  ;;  %v693_v47 = vld [vmem:[%s2118_s1 + $0x1f0] ss:$0 sm:$0xff] }
 0x68b   :  { %805 = vmatpush.msrb.mxu3 %v772_v46 }
 0x68c   :  { %v639_v53 = vmul.f32 %v1467_v41, %v638_v51  ;;  %v1815_v55 = vadd.f32 %v679_v52, %v556_v50 }
 0x68e   :  { %v643_v18 = vsel %vm642_vm12, %v1467_v41, %v639_v53  ;;  %1397 = vmatmul.msk.f32.vlgmr.msrb.gmra.mxu2 %vm131_vm1, %v1815_v55 }
 0x68f   :  { %v675_v57 = vmul.f32 %v643_v18, %v1772_v4 }
 0x691   :  { %v680_v58 = vmul.f32 %v675_v57, %v552_v56 }
 0x693   :  { %v1826_v59 = vadd.f32 %v680_v58, %v557_v22 }
 0x696   :  { %1398 = vmatmul.msk.f32.gmra.mxu2 %vm131_vm1, %v1826_v59 }
 0x6ad   :  { %v610_v35 = vpop.xlane.xlu0 %609 }
 0x6ae   :  { %v617_v61 = vmul.f32 %v610_v35, %v1767_v54 }
 0x6b0   :  { %v622_v62 = vadd.f32 1e-05, %v617_v61 }
 0x6b2   :  { %1468 = vrsqrt.f32 %v622_v62  ;;  %vm660_vm2 = vweird.f32 %v622_v62 }
 0x6b8   :  { %v1469_v31 = vpop.eup %1468 }
 0x6b9   :  { %v655_v1 = vmul.f32 %v1469_v31, %v622_v62  ;;  %vm661_vm14 = vweird.f32 %v1469_v31 }
 0x6ba   :  { %vm662_vm3 = vmor %vm660_vm2, %vm661_vm14 }
 0x6bb   :  { %v656_v2 = vmul.f32 %v1469_v31, %v655_v1 }
 0x6bd   :  { %v607_v63 = vpop.xlane.xlu2 %606  ;;  %v657_v39 = vmul.f32 0.5, %v656_v2 }
 0x6be   :  { %v616_v60 = vmul.f32 %v607_v63, %v1767_v54 }
 0x6bf   :  { %v658_v7 = vsub.f32 1.5, %v657_v39 }
 0x6c0   :  { %v621_v0 = vadd.f32 1e-05, %v616_v60 }
 0x6c1   :  { %v659_v15 = vmul.f32 %v1469_v31, %v658_v7 }
 0x6c2   :  { %1470 = vrsqrt.f32 %v621_v0  ;;  %vm650_vm15 = vweird.f32 %v621_v0 }
 0x6c3   :  { %v663_v23 = vsel %vm662_vm3, %v1469_v31, %v659_v15 }
 0x6c4   :  { %v677_v28 = vmul.f32 %v663_v23, %v1778_v9 }
 0x6c6   :  { %v682_v32 = vmul.f32 %v677_v28, %v554_v30 }
 0x6c8   :  { %v1471_v3 = vpop.eup %1470  ;;  %v1854_v37 = vadd.f32 %v682_v32, %v559_v34 }
 0x6c9   :  { %v645_v4 = vmul.f32 %v1471_v3, %v621_v0  ;;  %vm651_vm13 = vweird.f32 %v1471_v3 }
 0x6ca   :  { %vm652_vm0 = vmor %vm650_vm15, %vm651_vm13 }
 0x6cb   :  { %v646_v6 = vmul.f32 %v1471_v3, %v645_v4 }
 0x6cd   :  { %v647_v8 = vmul.f32 0.5, %v646_v6  ;;  %v613_v10 = vpop.xlane.xlu1 %612 }
 0x6ce   :  { %v618_v11 = vmul.f32 %v613_v10, %v1767_v54 }
 0x6cf   :  { %v648_v12 = vsub.f32 1.5, %v647_v8 }
 0x6d0   :  { %v623_v13 = vadd.f32 1e-05, %v618_v11 }
 0x6d1   :  { %v649_v16 = vmul.f32 %v1471_v3, %v648_v12 }
 0x6d2   :  { %1472 = vrsqrt.f32 %v623_v13  ;;  %vm670_vm7 = vweird.f32 %v623_v13 }
 0x6d3   :  { %v653_v17 = vsel %vm652_vm0, %v1471_v3, %v649_v16  ;;  %v775_v3 = vld [vmem:[%s2118_s1 + $0x240] ss:$0 sm:$0xff] }
 0x6d4   :  { %v676_v21 = vmul.f32 %v653_v17, %v1784_v14 }
 0x6d6   :  { %v681_v25 = vmul.f32 %v676_v21, %v553_v19 }
 0x6d8   :  { %v1473_v26 = vpop.eup %1472  ;;  %v1843_v27 = vadd.f32 %v681_v25, %v558_v24 }
 0x6d9   :  { %v665_v29 = vmul.f32 %v1473_v26, %v623_v13  ;;  %vm671_vm6 = vweird.f32 %v1473_v26 }
 0x6da   :  { %1399 = vmatmul.msk.f32.gmra.mxu2 %vm131_vm1, %v1843_v27  ;;  %vm672_vm8 = vmor %vm670_vm7, %vm671_vm6  ;;  %vm994_vm7 = vcmask 1040384  }
 0x6db   :  { %v666_v14 = vmul.f32 %v1473_v26, %v665_v29 }
 0x6dd   :  { %v667_v33 = vmul.f32 0.5, %v666_v14 }
 0x6df   :  { %v668_v36 = vsub.f32 1.5, %v667_v33 }
 0x6e1   :  { %v669_v9 = vmul.f32 %v1473_v26, %v668_v36 }
 0x6e2   :  { %1400 = vmatmul.msk.f32.gmra.mxu2 %vm131_vm1, %v1854_v37 }
 0x6e3   :  { %v673_v38 = vsel %vm672_vm8, %v1473_v26, %v669_v9 }
 0x6e4   :  { %v678_v41 = vmul.f32 %v673_v38, %v1790_v20  ;;  %v771_v20 = vld [vmem:[%s2118_s1 + $0x200] sm:$0xff] }
 0x6e5   :  { %806 = vmatpush.msrb.mxu3 %v771_v20 }
 0x6e6   :  { %v683_v43 = vmul.f32 %v678_v41, %v555_v40 }
 0x6e8   :  { %v1865_v44 = vadd.f32 %v683_v43, %v560_v42 }
 0x6ea   :  { %1401 = vmatmul.msk.f32.gmra.mxu2 %vm131_vm1, %v1865_v44 }
 0x711   :  { %v726_v48 = vpop.f32.mrf.mxu2 }
 0x712   :  { %v727_v49 = vadd.f32 %v726_v48, %v693_v47 }
 0x714   :  { %v766_v50 = vmax.f32 %v727_v49, 0.0 }
 0x716   :  { %1402 = vmatmul.msk.f32.vlgmr.msrb.gmra.mxu3 %vm131_vm1, %v766_v50 }
 0x719   :  { %v729_v51 = vpop.f32.mrf.mxu2 }
 0x71a   :  { %v730_v52 = vadd.f32 %v729_v51, %v693_v47 }
 0x71c   :  { %v767_v53 = vmax.f32 %v730_v52, 0.0 }
 0x71e   :  { %1403 = vmatmul.msk.f32.gmra.mxu3 %vm131_vm1, %v767_v53 }
 0x75d   :  { %v732_v18 = vpop.f32.mrf.mxu2 }
 0x75e   :  { %v733_v56 = vadd.f32 %v732_v18, %v693_v47 }
 0x760   :  { %750 = vrot.lane.b32.xlu2 %v733_v56, %s1548_s18 }
 0x765   :  { %v735_v57 = vpop.f32.mrf.mxu2 }
 0x766   :  { %v736_v22 = vadd.f32 %v735_v57, %v693_v47 }
 0x768   :  { %752 = vrot.lane.b32.xlu0 %v736_v22, %s1548_s18  ;;  %v1027_v22 = vld [vmem:[%s2118_s1 + $0x3c0] sm:$0xff] }
 0x769   :  { %1050 = vmatpush.msra.mxu1 %v1027_v22 }
 0x76d   :  { %v738_v58 = vpop.f32.mrf.mxu2 }
 0x76e   :  { %v739_v35 = vadd.f32 %v738_v58, %v693_v47  ;;  %v1026_v58 = vld [vmem:[%s2118_s1 + $0x3b0] sm:$0xff] }
 0x76f   :  { %1051 = vmatpush.msra.mxu1 %v1026_v58 }
 0x770   :  { %754 = vrot.lane.b32.xlu1 %v739_v35, %s1548_s18  ;;  %v1025_v35 = vld [vmem:[%s2118_s1 + $0x3a0] sm:$0xff] }
 0x771   :  { %1052 = vmatpush.msra.mxu1 %v1025_v35 }
 0x799   :  { %v808_v1 = vpop.f32.mrf.mxu3 }
 0x79a   :  { %v809_v11 = vadd.f32 %v808_v1, %v775_v3 }
 0x79c   :  { %v848_v15 = vmax.f32 %v809_v11, 0.0  ;;  %v996_v11 = vld [vmem:[%s2118_s1 + $0x340] sm:$0xff] }
 0x79e   :  { %v853_v23 = vadd.f32 %v848_v15, %v1815_v55 }
 0x7a0   :  { %v868_v28 = vsel %vm131_vm1, %v853_v23, 0.0 }
 0x7a1   :  { %v811_v2 = vpop.f32.mrf.mxu3 }
 0x7a2   :  { %v812_v19 = vadd.f32 %v811_v2, %v775_v3 }
 0x7a4   :  { %v849_v25 = vmax.f32 %v812_v19, 0.0 }
 0x7ba   :  { %v751_v61 = vpop.permute.xlu2 %750 }
 0x7bb   :  { %v768_v62 = vmax.f32 %v751_v61, 0.0  ;;  %v1024_v61 = vld [vmem:[%s2118_s1 + $0x390] sm:$0xff] }
 0x7bc   :  { %1053 = vmatpush.msra.mxu1 %v1024_v61 }
 0x7bd   :  { %1404 = vmatmul.msk.f32.gmra.mxu3 %vm131_vm1, %v768_v62 }
 0x7da   :  { %v753_v63 = vpop.permute.xlu0 %752 }
 0x7db   :  { %v769_v31 = vmax.f32 %v753_v63, 0.0 }
 0x7dd   :  { %1405 = vmatmul.msk.f32.gmra.mxu3 %vm131_vm1, %v769_v31 }
 0x7e2   :  { %v755_v60 = vpop.permute.xlu1 %754 }
 0x7e3   :  { %v770_v0 = vmax.f32 %v755_v60, 0.0 }
 0x7e5   :  { %1406 = vmatmul.msk.f32.gmra.mxu3 %vm131_vm1, %v770_v0 }
 0x840   :  { %v814_v39 = vpop.f32.mrf.mxu3 }
 0x841   :  { %v815_v4 = vadd.f32 %v814_v39, %v775_v3 }
 0x843   :  { %832 = vrot.lane.b32.xlu0 %v815_v4, %s1548_s18 }
 0x860   :  { %v817_v5 = vpop.f32.mrf.mxu3 }
 0x861   :  { %v818_v6 = vadd.f32 %v817_v5, %v775_v3 }
 0x863   :  { %834 = vrot.lane.b32.xlu2 %v818_v6, %s1548_s18  ;;  %v998_v6 = vld [vmem:[%s2118_s1 + $0x360] sm:$0xff] }
 0x868   :  { %v820_v7 = vpop.f32.mrf.mxu3 }
 0x869   :  { %v821_v8 = vadd.f32 %v820_v7, %v775_v3  ;;  %v999_v3 = vld [vmem:[%s2118_s1 + $0x370] sm:$0xff] }
 0x86a   :  { %1016 = vmatpush.msra.mxu0 %v999_v3 }
 0x86b   :  { %836 = vrot.lane.b32.xlu1 %v821_v8, %s1548_s18  ;;  %v997_v8 = vld [vmem:[%s2118_s1 + $0x350] sm:$0xff] }
 0x86c   :  { %1017 = vmatpush.msra.mxu0 %v998_v6 }
 0x86e   :  { %1018 = vmatpush.msra.mxu0 %v997_v8 }
 0x870   :  { %1019 = vmatpush.msra.mxu0 %v996_v11  ;;  %v862_v11 = vld [vmem:[%s2118_s1 + $0x290] sm:$0xf] }
 0x8b5   :  { %v833_v10 = vpop.permute.xlu0 %832 }
 0x8b6   :  { %v850_v12 = vmax.f32 %v833_v10, 0.0 }
 0x8b8   :  { %v855_v13 = vadd.f32 %v850_v12, %v1843_v27  ;;  %v854_v27 = vadd.f32 %v849_v25, %v1826_v59 }
 0x8ba   :  { %v874_v16 = vsel %vm131_vm1, %v855_v13, 0.0  ;;  %v871_v29 = vsel %vm131_vm1, %v854_v27, 0.0 }
 0x8bb   :  { %875 = vadd.xlane.f32.xlu0 %v874_v16 }
 0x8bd   :  { %v835_v17 = vpop.permute.xlu2 %834 }
 0x8be   :  { %v851_v21 = vmax.f32 %v835_v17, 0.0 }
 0x8c0   :  { %v856_v24 = vadd.f32 %v851_v21, %v1854_v37 }
 0x8c2   :  { %v877_v26 = vsel %vm131_vm1, %v856_v24, 0.0 }
 0x8c3   :  { %878 = vadd.xlane.f32.xlu2 %v877_v26  ;;  %869 = vadd.xlane.f32.xlu0 %v868_v28  ;;  %v860_v26 = vld [vmem:[%s2118_s1 + $0x270] sm:$0xff] }
 0x8cb   :  { %872 = vadd.xlane.f32.xlu2 %v871_v29 }
 0x8dd   :  { %v837_v30 = vpop.permute.xlu1 %836 }
 0x8de   :  { %v852_v14 = vmax.f32 %v837_v30, 0.0 }
 0x8e0   :  { %v857_v32 = vadd.f32 %v852_v14, %v1865_v44 }
 0x8e2   :  { %v880_v55 = vsel %vm573_vm5, %v857_v32, 0.0 }
 0x8e3   :  { %881 = vadd.xlane.f32.xlu1 %v880_v55 }
 0x92e   :  { %v876_v33 = vpop.xlane.xlu0 %875 }
 0x92f   :  { %v885_v34 = vmul.f32 %v876_v33, %v1767_v54 }
 0x931   :  { %v1906_v36 = vsub.f32 %v855_v13, %v885_v34 }
 0x933   :  { %v895_v37 = vmul.f32 %v1906_v36, %v1906_v36 }
 0x935   :  { %v904_v59 = vsel %vm131_vm1, %v895_v37, 0.0 }
 0x936   :  { %v879_v9 = vpop.xlane.xlu2 %878  ;;  %v870_v38 = vpop.xlane.xlu0 %869  ;;  %905 = vadd.xlane.f32.xlu1 %v904_v59 }
 0x937   :  { %v886_v40 = vmul.f32 %v879_v9, %v1767_v54  ;;  %v883_v41 = vmul.f32 %v870_v38, %v1767_v54 }
 0x939   :  { %v1913_v42 = vsub.f32 %v856_v24, %v886_v40  ;;  %v1915_v43 = vsub.f32 %v853_v23, %v883_v41 }
 0x93b   :  { %v896_v44 = vmul.f32 %v1913_v42, %v1913_v42  ;;  %v893_v45 = vmul.f32 %v1915_v43, %v1915_v43 }
 0x93d   :  { %v907_v46 = vsel %vm131_vm1, %v896_v44, 0.0  ;;  %v898_v20 = vsel %vm131_vm1, %v893_v45, 0.0  ;;  %v861_v45 = vld [vmem:[%s2118_s1 + $0x280] sm:$0xff] }
 0x93e   :  { %908 = vadd.xlane.f32.xlu0 %v907_v46  ;;  %v873_v47 = vpop.xlane.xlu2 %872  ;;  %899 = vadd.xlane.f32.xlu1 %v898_v20 }
 0x93f   :  { %v884_v48 = vmul.f32 %v873_v47, %v1767_v54 }
 0x941   :  { %v1924_v49 = vsub.f32 %v854_v27, %v884_v48  ;;  %v866_v48 = vld [vmem:[%s2118_s1 + $0x2d0] sm:$0xff] }
 0x943   :  { %v894_v50 = vmul.f32 %v1924_v49, %v1924_v49 }
 0x945   :  { %v901_v51 = vsel %vm131_vm1, %v894_v50, 0.0 }
 0x946   :  { %902 = vadd.xlane.f32.xlu0 %v901_v51 }
 0x956   :  { %v882_v52 = vpop.xlane.xlu1 %881 }
 0x957   :  { %v887_v53 = vmul.f32 %v882_v52, %v1767_v54  ;;  %v858_v52 = vld [vmem:[%s2118_s1 + $0x250] sm:$0xff] }
 0x959   :  { %v1930_v18 = vsub.f32 %v857_v32, %v887_v53  ;;  %v865_v32 = vld [vmem:[%s2118_s1 + $0x2c0] sm:$0xff] }
 0x95b   :  { %v897_v56 = vmul.f32 %v1930_v18, %v1930_v18 }
 0x95d   :  { %v910_v57 = vsel %vm573_vm5, %v897_v56, 0.0 }
 0x95e   :  { %911 = vadd.xlane.f32.xlu2 %v910_v57 }
 0x9a9   :  { %v906_v62 = vpop.xlane.xlu1 %905 }
 0x9aa   :  { %v915_v63 = vmul.f32 %v906_v62, %v1767_v54  ;;  %v864_v62 = vld [vmem:[%s2118_s1 + $0x2b0] sm:$0xff] }
 0x9ac   :  { %v920_v31 = vadd.f32 1e-05, %v915_v63 }
 0x9ae   :  { %1474 = vrsqrt.f32 %v920_v31  ;;  %vm949_vm9 = vweird.f32 %v920_v31 }
 0x9b1   :  { %v909_v60 = vpop.xlane.xlu0 %908  ;;  %v900_v0 = vpop.xlane.xlu1 %899 }
 0x9b2   :  { %v916_v1 = vmul.f32 %v909_v60, %v1767_v54  ;;  %v913_v2 = vmul.f32 %v900_v0, %v1767_v54 }
 0x9b4   :  { %v1475_v39 = vpop.eup %1474  ;;  %v921_v4 = vadd.f32 1e-05, %v916_v1  ;;  %v918_v5 = vadd.f32 1e-05, %v913_v2 }
 0x9b5   :  { %v944_v7 = vmul.f32 %v1475_v39, %v920_v31  ;;  %vm950_vm5 = vweird.f32 %v1475_v39 }
 0x9b6   :  { %1476 = vrsqrt.f32 %v921_v4  ;;  %vm951_vm10 = vmor %vm949_vm9, %vm950_vm5  ;;  %vm959_vm13 = vweird.f32 %v921_v4  ;;  %vm929_vm15 = vweird.f32 %v918_v5 }
 0x9b7   :  { %v945_v10 = vmul.f32 %v1475_v39, %v944_v7  ;;  %1478 = vrsqrt.f32 %v918_v5 }
 0x9b9   :  { %v946_v12 = vmul.f32 0.5, %v945_v10  ;;  %v903_v13 = vpop.xlane.xlu0 %902 }
 0x9ba   :  { %v914_v15 = vmul.f32 %v903_v13, %v1767_v54  ;;  %v867_v13 = vld [vmem:[%s2118_s1 + $0x2e0] sm:$0xf] }
 0x9bb   :  { %v947_v16 = vsub.f32 1.5, %v946_v12 }
 0x9bc   :  { %v1477_v17 = vpop.eup %1476  ;;  %v919_v19 = vadd.f32 1e-05, %v914_v15 }
 0x9bd   :  { %v1479_v21 = vpop.eup %1478  ;;  %v948_v23 = vmul.f32 %v1475_v39, %v947_v16  ;;  %v954_v24 = vmul.f32 %v1477_v17, %v921_v4  ;;  %vm960_vm11 = vweird.f32 %v1477_v17 }
 0x9be   :  { %v924_v25 = vmul.f32 %v1479_v21, %v918_v5  ;;  %1480 = vrsqrt.f32 %v919_v19  ;;  %vm930_vm12 = vweird.f32 %v1479_v21  ;;  %vm961_vm14 = vmor %vm959_vm13, %vm960_vm11  ;;  %vm939_vm3 = vweird.f32 %v919_v19 }
 0x9bf   :  { %v952_v28 = vsel %vm951_vm10, %v1475_v39, %v948_v23  ;;  %v955_v27 = vmul.f32 %v1477_v17, %v954_v24  ;;  %vm931_vm0 = vmor %vm929_vm15, %vm930_vm12  ;;  %vm1099_vm10 = vcmask 156672   ;;  %vm1175_vm11 = vcmask 254976  }
 0x9c0   :  { %v975_v29 = vmul.f32 %v952_v28, %v1906_v36  ;;  %v925_v30 = vmul.f32 %v1479_v21, %v924_v25 }
 0x9c1   :  { %v956_v14 = vmul.f32 0.5, %v955_v27 }
 0x9c2   :  { %v980_v55 = vmul.f32 %v975_v29, %v860_v26  ;;  %v926_v33 = vmul.f32 0.5, %v925_v30 }
 0x9c3   :  { %v957_v34 = vsub.f32 1.5, %v956_v14 }
 0x9c4   :  { %v1481_v37 = vpop.eup %1480  ;;  %v927_v59 = vsub.f32 1.5, %v926_v33  ;;  %v985_v9 = vadd.f32 %v980_v55, %v865_v32  ;;  %v1097_v32 = vld [vmem:[%s2118_s1 + $0x560] sm:$0x3] }
 0x9c5   :  { %v958_v38 = vmul.f32 %v1477_v17, %v957_v34  ;;  %v934_v40 = vmul.f32 %v1481_v37, %v919_v19  ;;  %vm940_vm2 = vweird.f32 %v1481_v37  ;;  %v1028_v19 = vld [vmem:[%s2118_s1 + $0x3d0] ss:$0 sm:$0xff] }
 0x9c6   :  { %v928_v41 = vmul.f32 %v1479_v21, %v927_v59  ;;  %1408 = vmatmul.msk.f32.vlgmr.msra.gmra.mxu1 %vm131_vm1, %v985_v9  ;;  %vm941_vm6 = vmor %vm939_vm3, %vm940_vm2  ;;  %vm1314_vm3 = vcmask 74752  }
 0x9c7   :  { %v962_v36 = vsel %vm961_vm14, %v1477_v17, %v958_v38  ;;  %v935_v44 = vmul.f32 %v1481_v37, %v934_v40 }
 0x9c8   :  { %v932_v46 = vsel %vm931_vm0, %v1479_v21, %v928_v41  ;;  %v976_v20 = vmul.f32 %v962_v36, %v1913_v42  ;;  %v859_v42 = vld [vmem:[%s2118_s1 + $0x260] sm:$0xff] }
 0x9c9   :  { %v936_v47 = vmul.f32 0.5, %v935_v44  ;;  %v973_v50 = vmul.f32 %v932_v46, %v1915_v43  ;;  %v863_v43 = vld [vmem:[%s2118_s1 + $0x2a0] sm:$0xff] }
 0x9ca   :  { %v981_v51 = vmul.f32 %v976_v20, %v861_v45  ;;  %v1148_v45 = vld [vmem:[%s2118_s1 + $0x410] sm:$0xff]  ;;  %v1147_v46 = vld [vmem:[%s2118_s1 + $0x400] sm:$0xff] }
 0x9cb   :  { %v937_v53 = vsub.f32 1.5, %v936_v47  ;;  %v978_v22 = vmul.f32 %v973_v50, %v858_v52  ;;  %v1146_v20 = vld [vmem:[%s2118_s1 + $0x3f0] sm:$0xff] }
 0x9cc   :  { %v986_v56 = vadd.f32 %v981_v51, %v866_v48  ;;  %v1145_v51 = vld [vmem:[%s2118_s1 + $0x3e0] sm:$0xff] }
 0x9cd   :  { %v938_v57 = vmul.f32 %v1481_v37, %v937_v53  ;;  %v983_v60 = vadd.f32 %v978_v22, %v863_v43  ;;  %v1149_v53 = vld [vmem:[%s2118_s1 + $0x420] ss:$0 sm:$0xff] }
 0x9ce   :  { %1409 = vmatmul.msk.f32.gmra.mxu1 %vm131_vm1, %v986_v56 }
 0x9cf   :  { %v942_v58 = vsel %vm941_vm6, %v1481_v37, %v938_v57  ;;  %v989_v2 = vrot.slane %v983_v60, 7  ;;  %v1202_v60 = vld [vmem:[%s2118_s1 + $0x450] sm:$0xff] }
 0x9d0   :  { %v974_v35 = vmul.f32 %v942_v58, %v1924_v49 }
 0x9d1   :  { %v912_v61 = vpop.xlane.xlu2 %911 }
 0x9d2   :  { %v979_v63 = vmul.f32 %v974_v35, %v859_v42  ;;  %v917_v31 = vmul.f32 %v912_v61, %v1767_v54 }
 0x9d4   :  { %v922_v0 = vadd.f32 1e-05, %v917_v31  ;;  %v984_v1 = vadd.f32 %v979_v63, %v864_v62  ;;  %v1205_v62 = vld [vmem:[%s2118_s1 + $0x480] sm:$0xff]  ;;  %v1204_v63 = vld [vmem:[%s2118_s1 + $0x470] sm:$0xff] }
 0x9d5   :  { %v1203_v31 = vld [vmem:[%s2118_s1 + $0x460] sm:$0xff] }
 0x9d6   :  { %1482 = vrsqrt.f32 %v922_v0  ;;  %v992_v3 = vrot.slane %v984_v1, 6  ;;  %vm969_vm5 = vweird.f32 %v922_v0 }
 0x9d8   :  { %v1994_v39 = vsel %vm994_vm7, %v989_v2, %v992_v3 }
 0x9d9   :  { %1407 = vmatmul.msk.f32.vlgmr.msra.gmra.mxu0 %vm131_vm1, %v1994_v39 }
 0x9dc   :  { %v1483_v49 = vpop.eup %1482 }
 0x9dd   :  { %v964_v4 = vmul.f32 %v1483_v49, %v922_v0  ;;  %vm970_vm8 = vweird.f32 %v1483_v49  ;;  %v1234_v0 = vld [vmem:[%s2118_s1 + $0x4d0] sm:$0xff] }
 0x9de   :  { %vm971_vm9 = vmor %vm969_vm5, %vm970_vm8  ;;  %1251 = vmatpush.msra.mxu3 %v1234_v0 }
 0x9df   :  { %v965_v5 = vmul.f32 %v1483_v49, %v964_v4 }
 0x9e1   :  { %v966_v6 = vmul.f32 0.5, %v965_v5 }
 0x9e3   :  { %v967_v7 = vsub.f32 1.5, %v966_v6 }
 0x9e5   :  { %v968_v8 = vmul.f32 %v1483_v49, %v967_v7 }
 0x9e7   :  { %v972_v10 = vsel %vm971_vm9, %v1483_v49, %v968_v8 }
 0x9e8   :  { %v977_v12 = vmul.f32 %v972_v10, %v1930_v18  ;;  %v1000_v18 = vld [vmem:[%s2118_s1 + $0x380] ss:$0 sm:$0xff]  ;;  %v1173_v10 = vld [vmem:[%s2118_s1 + $0x430] ss:$0 sm:$0xff] }
 0x9ea   :  { %v982_v15 = vmul.f32 %v977_v12, %v862_v11 }
 0x9ec   :  { %v987_v16 = vadd.f32 %v982_v15, %v867_v13  ;;  %v1174_v13 = vld [vmem:[%s2118_s1 + $0x440] ss:$0 sm:$0xff] }
 0x9ee   :  { %1410 = vmatmul.msk.f32.gmra.mxu1 %vm131_vm1, %v987_v16 }
 0xa43   :  { %v1055_v17 = vpop.f32.mrf.mxu1 }
 0xa44   :  { %v1056_v23 = vadd.f32 %v1055_v17, %v1028_v19 }
 0xa4b   :  { %v1058_v21 = vpop.f32.mrf.mxu1 }
 0xa4c   :  { %v1059_v24 = vadd.f32 %v1058_v21, %v1028_v19  ;;  %v1232_v21 = vld [vmem:[%s2118_s1 + $0x4b0] sm:$0xff] }
 0xa4e   :  { %v1437_v25 = vpack.i.bf16 %v1056_v23, %v1059_v24 }
 0xa56   :  { %v1021_v27 = vpop.f32.mrf.mxu0 }
 0xa57   :  { %v1022_v29 = vadd.f32 %v1021_v27, %v1000_v18 }
 0xa6b   :  { %v1061_v26 = vpop.f32.mrf.mxu1 }
 0xa6c   :  { %v1062_v28 = vadd.f32 %v1061_v26, %v1028_v19  ;;  %v1233_v19 = vld [vmem:[%s2118_s1 + $0x4c0] sm:$0xff] }
 0xa6d   :  { %1252 = vmatpush.msra.mxu3 %v1233_v19 }
 0xa6e   :  { %1115 = vrot.lane.b32.xlu0 %v1062_v28, %s1548_s18  ;;  %1411 = vmatpush.xpose.msk.msra.mxu2 %vm131_vm1, %v1062_v28  ;;  %v1235_v28 = vld [vmem:[%s2118_s1 + $0x4e0] ss:$0 sm:$0xff] }
 0xa6f   :  { %1253 = vmatpush.msra.mxu3 %v1232_v21 }
 0xa72   :  { %1412 = vmatpush.xpose.msk.msra.mxu2 %vm131_vm1, %v1059_v24 }
 0xa76   :  { %1413 = vmatpush.xpose.msk.msra.mxu2 %vm131_vm1, %v1056_v23  ;;  %v1231_v23 = vld [vmem:[%s2118_s1 + $0x4a0] sm:$0xff] }
 0xa77   :  { %1254 = vmatpush.msra.mxu3 %v1231_v23 }
 0xa79   :  { %1414 = vmatmul.msk.f32.vlgmr.msra.gmra.mxu2 %vm131_vm1, %v1022_v29 }
 0xa7a   :  { %1165 = vmatpush.msrb.mxu2 %v1148_v45 }
 0xa7c   :  { %1166 = vmatpush.msrb.mxu2 %v1147_v46 }
 0xa7e   :  { %1167 = vmatpush.msrb.mxu2 %v1146_v20 }
 0xa80   :  { %1168 = vmatpush.msrb.mxu2 %v1145_v51 }
 0xae0   :  { %v1116_v30 = vpop.permute.xlu0 %1115 }
 0xae1   :  { %1415 = vmatpush.msk.msrb.mxu0 %vm434_vm4, %v1116_v30  ;;  %vm1119_vm4 = vcmask 162816  }
 0xafc   :  { %v1093_v14 = vpop.f32.mrf.mxu2 }
 0xafd   :  { %v1096_v55 = vmul.f32 0.17677669, %v1093_v14 }
 0xaff   :  { %v1098_v33 = vadd.f32 %v1097_v32, %v1096_v55 }
 0xb01   :  { %v1100_v34 = vsel %vm1099_vm10, %v1098_v33, -inf }
 0xb02   :  { %1101 = vmax.xlane.f32.xlu2 %v1100_v34 }
 0xb1a   :  { %1438 = vrot.lane.b32.xlu2 %v1437_v25, %s1548_s18 }
 0xb75   :  { %v1102_v37 = vpop.xlane.xlu2 %1101 }
 0xb76   :  { %v1103_v59 = vsub.f32 %v1098_v33, %v1102_v37  ;;  %v1289_v37 = vld [vmem:[%s2118_s1 + $0x540] sm:$0xff] }
 0xb77   :  { %1306 = vmatpush.msra.mxu2 %v1289_v37 }
 0xb78   :  { %v1104_v9 = vmul.f32 1.442695, %v1103_v59  ;;  %v1288_v59 = vld [vmem:[%s2118_s1 + $0x530] sm:$0xff] }
 0xb79   :  { %1307 = vmatpush.msra.mxu2 %v1288_v59 }
 0xb7a   :  { %1484 = vpow2.f32 %v1104_v9  ;;  %v1287_v9 = vld [vmem:[%s2118_s1 + $0x520] sm:$0xff] }
 0xb7b   :  { %1308 = vmatpush.msra.mxu2 %v1287_v9 }
 0xb7d   :  { %v1439_v38 = vpop.permute.xlu2 %1438 }
 0xb7e   :  { %v1440_v40 = vunpack.i.l.bf16 %v1439_v38  ;;  %v1441_v36 = vunpack.i.h.bf16 %v1439_v38  ;;  %v1286_v38 = vld [vmem:[%s2118_s1 + $0x510] sm:$0xff] }
 0xb7f   :  { %1309 = vmatpush.msra.mxu2 %v1286_v38 }
 0xb80   :  { %v1485_v41 = vpop.eup %1484  ;;  %1139 = vmatpush.msrb.mxu0 %v1440_v40 }
 0xb81   :  { %v1106_v44 = vsel %vm1099_vm10, %v1485_v41, 0.0 }
 0xb82   :  { %1107 = vadd.xlane.f32.xlu1 %v1106_v44  ;;  %1140 = vmatpush.msrb.mxu0 %v1441_v36 }
 0xb84   :  { %1222 = vmatpush.msra.mxu0 %v1205_v62 }
 0xb86   :  { %1223 = vmatpush.msra.mxu0 %v1204_v63 }
 0xb88   :  { %1224 = vmatpush.msra.mxu0 %v1203_v31 }
 0xb8a   :  { %1225 = vmatpush.msra.mxu0 %v1202_v60 }
 0xbf5   :  { %v1108_v47 = vpop.xlane.xlu1 %1107 }
 0xbf6   :  { %1486 = vrcp.f32 %v1108_v47 }
 0xbfc   :  { %v1487_v48 = vpop.eup %1486 }
 0xbfd   :  { %v1110_v50 = vmul.f32 %v1487_v48, %v1485_v41 }
 0xbff   :  { %1416 = vmatmul.msk.f32.vlgmr.msrb.gmra.mxu0 %vm1119_vm4, %v1110_v50  ;;  %v1260_v50 = vld [vmem:[%s2118_s1 + $0x4f0] ss:$0 sm:$0xff] }
 0xc7c   :  { %v1142_v52 = vpop.f32.mrf.mxu0 }
 0xc7d   :  { %1417 = vmatmul.msk.f32.vlgmr.msrb.gmra.mxu2 %vm131_vm1, %v1142_v52 }
 0xd00   :  { %v1170_v56 = vpop.f32.mrf.mxu2 }
 0xd01   :  { %v1171_v57 = vadd.f32 %v1170_v56, %v1149_v53 }
 0xd03   :  { %v1176_v22 = vsel %vm1175_vm11, %v1171_v57, 0.0 }
 0xd04   :  { %1177 = vadd.xlane.f32.xlu1 %v1176_v22 }
 0xd77   :  { %v1178_v42 = vpop.xlane.xlu1 %1177 }
 0xd78   :  { %v1179_v58 = vmul.f32 %v1178_v42, %v1767_v54 }
 0xd7a   :  { %v1180_v43 = vsub.f32 %v1171_v57, %v1179_v58  ;;  %v1290_v57 = vld [vmem:[%s2118_s1 + $0x550] ss:$0 sm:$0xff] }
 0xd7c   :  { %v1181_v35 = vmul.f32 %v1180_v43, %v1180_v43 }
 0xd7e   :  { %v1182_v61 = vsel %vm1175_vm11, %v1181_v35, 0.0 }
 0xd7f   :  { %1183 = vadd.xlane.f32.xlu1 %v1182_v61 }
 0xdf2   :  { %v1184_v1 = vpop.xlane.xlu1 %1183 }
 0xdf3   :  { %v1185_v2 = vmul.f32 %v1184_v1, %v1767_v54 }
 0xdf5   :  { %v1186_v3 = vadd.f32 1e-05, %v1185_v2 }
 0xdf7   :  { %1488 = vrsqrt.f32 %v1186_v3  ;;  %vm1193_vm13 = vweird.f32 %v1186_v3 }
 0xdfd   :  { %v1489_v49 = vpop.eup %1488 }
 0xdfe   :  { %v1188_v4 = vmul.f32 %v1489_v49, %v1186_v3  ;;  %vm1194_vm12 = vweird.f32 %v1489_v49 }
 0xdff   :  { %vm1195_vm14 = vmor %vm1193_vm13, %vm1194_vm12 }
 0xe00   :  { %v1189_v5 = vmul.f32 %v1489_v49, %v1188_v4 }
 0xe02   :  { %v1190_v6 = vmul.f32 0.5, %v1189_v5 }
 0xe04   :  { %v1191_v7 = vsub.f32 1.5, %v1190_v6 }
 0xe06   :  { %v1192_v8 = vmul.f32 %v1489_v49, %v1191_v7 }
 0xe08   :  { %v1196_v11 = vsel %vm1195_vm14, %v1489_v49, %v1192_v8 }
 0xe09   :  { %v1197_v12 = vmul.f32 %v1196_v11, %v1180_v43 }
 0xe0b   :  { %v1198_v15 = vmul.f32 %v1197_v12, %v1173_v10 }
 0xe0d   :  { %v1199_v16 = vadd.f32 %v1198_v15, %v1174_v13 }
 0xe0f   :  { %v1200_v17 = vadd.f32 %v1199_v16, %v1994_v39  ;;  %v1206_v39 = vld [vmem:[%s2118_s1 + $0x490] ss:$0 sm:$0xff] }
 0xe11   :  { %1418 = vmatmul.msk.f32.vlgmr.msra.gmra.mxu0 %vm131_vm1, %v1200_v17  ;;  %1201 = vst.msk [vmem:[#allocation4] sm:$0x3] %vm1175_vm11, %v1200_v17 }
 0xe8e   :  { %v1227_v24 = vpop.f32.mrf.mxu0 }
 0xe8f   :  { %v1228_v25 = vadd.f32 %v1227_v24, %v1206_v39 }
 0xe91   :  { %v1230_v26 = vmax.f32 %v1228_v25, 0.0 }
 0xe93   :  { %1419 = vmatmul.msk.f32.vlgmr.msra.gmra.mxu3 %vm131_vm1, %v1230_v26 }
 0xf16   :  { %v1256_v18 = vpop.f32.mrf.mxu3 }
 0xf17   :  { %v1257_v27 = vadd.f32 %v1256_v18, %v1235_v28 }
 0xf19   :  { %v1259_v29 = vmax.f32 %v1257_v27, 0.0 }
 0xf1b   :  { %v1262_v30 = vsel %vm1175_vm11, %v1259_v29, 0.0 }
 0xf1c   :  { %1263 = vadd.xlane.f32.xlu0 %v1262_v30 }
 0xf8f   :  { %v1264_v14 = vpop.xlane.xlu0 %1263 }
 0xf90   :  { %v1265_v32 = vmul.f32 %v1264_v14, %v1767_v54 }
 0xf92   :  { %v1266_v55 = vsub.f32 %v1259_v29, %v1265_v32 }
 0xf94   :  { %v1267_v33 = vmul.f32 %v1266_v55, %v1266_v55 }
 0xf96   :  { %v1268_v34 = vsel %vm1175_vm11, %v1267_v33, 0.0 }
 0xf97   :  { %1269 = vadd.xlane.f32.xlu1 %v1268_v34 }
0x100a   :  { %v1270_v40 = vpop.xlane.xlu1 %1269 }
0x100b   :  { %v1271_v41 = vmul.f32 %v1270_v40, %v1767_v54  ;;  %v1261_v54 = vld [vmem:[%s2118_s1 + $0x500] ss:$0 sm:$0xff]  ;;  %s1346_s1 = sshll.u32 %s2120_s3, 4  ;;  %s1347_s1 = int_to_ptr.hbm [resolvable:$true] %s1346_s1 }
0x100c   :  { %1349 = dma.vmem_to_hbm [thread:$0]  %s1345_s15, 32, %s1347_s1, [#allocation5]  }
0x100d   :  { %v1272_v36 = vadd.f32 1e-05, %v1271_v41 }
0x100f   :  { %1490 = vrsqrt.f32 %v1272_v36  ;;  %vm1279_vm0 = vweird.f32 %v1272_v36 }
0x1015   :  { %v1491_v44 = vpop.eup %1490 }
0x1016   :  { %v1274_v45 = vmul.f32 %v1491_v44, %v1272_v36  ;;  %vm1280_vm15 = vweird.f32 %v1491_v44 }
0x1017   :  { %vm1281_vm2 = vmor %vm1279_vm0, %vm1280_vm15 }
0x1018   :  { %v1275_v46 = vmul.f32 %v1491_v44, %v1274_v45 }
0x101a   :  { %v1276_v20 = vmul.f32 0.5, %v1275_v46 }
0x101c   :  { %v1277_v47 = vsub.f32 1.5, %v1276_v20 }
0x101e   :  { %v1278_v48 = vmul.f32 %v1491_v44, %v1277_v47 }
0x1020   :  { %v1282_v51 = vsel %vm1281_vm2, %v1491_v44, %v1278_v48 }
0x1021   :  { %v1283_v52 = vmul.f32 %v1282_v51, %v1266_v55 }
0x1023   :  { %v1284_v53 = vmul.f32 %v1283_v52, %v1260_v50 }
0x1025   :  { %v1285_v56 = vadd.f32 %v1284_v53, %v1261_v54 }
0x1027   :  { %1420 = vmatmul.msk.f32.vlgmr.msra.gmra.mxu2 %vm131_vm1, %v1285_v56 }
0x10aa   :  { %v1311_v22 = vpop.f32.mrf.mxu2 }
0x10ab   :  { %v1312_v42 = vadd.f32 %v1311_v22, %v1290_v57 }
0x10ad   :  { %v1315_v58 = vsel %vm1314_vm3, %v1312_v42, -inf }
0x10ae   :  { %1316 = vmax.xlane.f32.xlu2 %v1315_v58 }
0x1121   :  { %v1317_v43 = vpop.xlane.xlu2 %1316 }
0x1122   :  { %v1318_v35 = vsub.f32 %v1312_v42, %v1317_v43 }
0x1124   :  { %v1319_v61 = vmul.f32 1.442695, %v1318_v35 }
0x1126   :  { %1492 = vpow2.f32 %v1319_v61 }
0x112c   :  { %v1493_v62 = vpop.eup %1492 }
0x112d   :  { %v1321_v63 = vsel %vm1314_vm3, %v1493_v62, 0.0 }
0x112e   :  { %1322 = vadd.xlane.f32.xlu1 %v1321_v63 }
0x11a1   :  { %v1323_v31 = vpop.xlane.xlu1 %1322 }
0x11a2   :  { %1494 = vlog2.f32 %v1323_v31 }
0x11a8   :  { %v1495_v60 = vpop.eup %1494 }
0x11a9   :  { %v1325_v0 = vmul.f32 0.6931472, %v1495_v60 }
0x11ab   :  { %v1326_v1 = vsub.f32 %v1318_v35, %v1325_v0 }
0x11ad   :  { %1327 = vst.msk [vmem:[#allocation2] sm:$0x3] %vm1314_vm3, %v1326_v1 }
0x11ae   :  { %1338 = dma.vmem_to_hbm [thread:$0]  %s1334_s20, 32, %s1336_s23, [#allocation3]  }
0x11af   :  { %1544 = dma.done.wait [#allocation3], 32  }
0x11b0   :  { %1545 = vsyncadd [#allocation3], 4294967264 }
0x11b1   :  { %1546 = dma.done.wait [#allocation5], 32  }
0x11b2   :  { %1547 = vsyncadd [#allocation5], 4294967264 }
0x11b3   :  { %1358 = vsyncpa [#allocation3], 1 }
0x11b4   :  { %1359 = vsyncpa [#allocation5], 1 }

</bundles_post_ra>
